<compile_context>
chip_gen: v6e
topology: v6e:2x2x1
jax: 0.10.0
libtpu: 0.0.40
codegen_flags: <defaults>
</compile_context>

<pallas_src>
import functools
import math

import jax
import jax.numpy as jnp
from jax import lax
from jax.experimental import pallas as pl
from jax.experimental.pallas import tpu as pltpu

LANE = 128
SUBLANE = 8


# ----------------------------------------------------------------------------
# Small helpers / generation-aware hardware queries
# ----------------------------------------------------------------------------
def _round_up(x, m):
    return ((x + m - 1) // m) * m


@functools.lru_cache(maxsize=None)
def _chip_info():
    """(num_tensorcores, vmem_capacity_bytes) with conservative fallbacks."""
    cores = 1
    vmem = 128 * 1024 * 1024
    try:
        info = pltpu.get_tpu_info()
        v = getattr(info, "vmem_capacity_bytes", None)
        if v:
            vmem = int(v)
        for attr in ("num_tensorcores", "num_cores", "core_count", "cores_per_chip"):
            c = getattr(info, attr, None)
            if c:
                cores = int(c)
                break
    except Exception:
        pass
    try:
        kind = jax.devices()[0].device_kind.lower()
        if "v7" in kind:
            cores = max(cores, 2)
            vmem = min(vmem, 64 * 1024 * 1024)
    except Exception:
        pass
    return cores, vmem


def _vmem_limit_bytes():
    _, cap = _chip_info()
    if cap <= 64 * 1024 * 1024:
        return 48 * 1024 * 1024   # v7x: leave compiler-scratch headroom under 64 MiB
    return 100 * 1024 * 1024      # v5e/v6e: 128 MiB physical


def _batch_blocks(bp):
    # Only split the padded batch across the "parallel" grid axis when the chip
    # actually has >1 TensorCore (v7x).  On single-TC v5e/v6e a split would just
    # run the whole serial recurrence twice back-to-back.
    cores, _ = _chip_info()
    if cores >= 2 and bp >= 2 * SUBLANE and (bp // 2) % SUBLANE == 0:
        return 2, bp // 2
    return 1, bp


# ----------------------------------------------------------------------------
# Feature probe: single-buffering of grid-invariant operands (pl.Buffered(1))
# ----------------------------------------------------------------------------
_SINGLE_BUFFER_OK = None


def _probe_single_buffering():
    if not hasattr(pl, "Buffered"):
        return False
    try:
        def k(x_ref, o_ref):
            o_ref[...] = x_ref[...] + 1.0

        fn = pl.pallas_call(
            k,
            out_shape=jax.ShapeDtypeStruct((16, 128), jnp.float32),
            grid_spec=pltpu.PrefetchScalarGridSpec(
                num_scalar_prefetch=0,
                grid=(2,),
                in_specs=[pl.BlockSpec((8, 128), lambda i: (i, 0),
                                       pipeline_mode=pl.Buffered(1))],
                out_specs=pl.BlockSpec((8, 128), lambda i: (i, 0))),
        )
        out = jax.block_until_ready(fn(jnp.zeros((16, 128), jnp.float32)))
        return bool(jnp.all(out == 1.0))
    except Exception:
        return False


def _single_buffer_ok():
    """Resolve the probe eagerly (must not be first triggered inside a jit trace)."""
    global _SINGLE_BUFFER_OK
    if _SINGLE_BUFFER_OK is None:
        _SINGLE_BUFFER_OK = _probe_single_buffering()
    return _SINGLE_BUFFER_OK


def _const_spec(shape):
    """BlockSpec for a grid-invariant operand; single-buffered when supported."""
    index_map = lambda b, t: (0,) * len(shape)
    if _SINGLE_BUFFER_OK:
        return pl.BlockSpec(shape, index_map, pipeline_mode=pl.Buffered(1))
    return pl.BlockSpec(shape, index_map)


# ----------------------------------------------------------------------------
# time_chunk sizing from the VMEM budget
# ----------------------------------------------------------------------------
def _choose_time_chunk(T, bb, dp_max, hp, op, single_buffer):
    limit = _vmem_limit_bytes()
    budget = int(limit * 0.6)
    wbuf = 1 if single_buffer else 2
    fixed = wbuf * 2 * (dp_max * 3 * hp + hp * 3 * hp)   # bf16 weights
    fixed += wbuf * 4 * (3 * hp + hp)                    # folded biases (f32)
    fixed += wbuf * (2 * hp * op + 4 * op)               # fc weight/bias
    fixed += 4 * bb * hp                                 # carried h scratch (f32)
    fixed += 2 * 4 * bb * op                             # fc output block (f32, dbl)
    per_tc = (2 * 2 * bb * dp_max        # x chunk, double-buffered bf16
              + 2 * 2 * bb * hp          # out chunk, double-buffered bf16
              + 4 * bb * 3 * hp)         # gi scratch, f32
    tc = (budget - fixed) // max(per_tc, 1)
    return int(max(1, min(tc, 128, T)))


def _pick_unroll(tc, bb, hp):
    # Gate the full unroll on vreg pressure / code size.
    if hp >= 512 or bb >= 64:
        return min(4, tc)
    if tc > 32:
        return 8
    return True


# ----------------------------------------------------------------------------
# Shared per-chunk GRU body
# ----------------------------------------------------------------------------
def _run_chunk(x_ref, wih_ref, whh_ref, bgi_ref, bhn_ref, gi_scr, h_scr, hp,
               t_valid, mask_tail, unroll, out_ref=None):
    """Run one time-chunk of the GRU recurrence; returns final f32 hidden state."""
    tc, bb, dp = x_ref.shape

    # hoisted input projection: ONE big bf16 MXU matmul for the whole chunk
    x_flat = x_ref[...].reshape(tc * bb, dp)
    gi = jnp.dot(x_flat, wih_ref[...], preferred_element_type=jnp.float32)
    gi_scr[...] = (gi + bgi_ref[...]).reshape(tc, bb, 3 * hp)   # biases folded

    # hoisted broadcast of the n-gate hidden bias (stays inside the r* term)
    bhn = jnp.broadcast_to(bhn_ref[...], (bb, hp))
    t0 = pl.program_id(1) * tc if mask_tail else 0

    def step(t, h):
        # only the unavoidable hidden-state matmul stays in the serial loop
        gh = jnp.dot(h.astype(whh_ref.dtype), whh_ref[...],
                     preferred_element_type=jnp.float32)        # (bb, 3hp) f32
        g = gi_scr[t]                                           # (bb, 3hp) f32
        rz = jax.nn.sigmoid(g[:, :2 * hp] + gh[:, :2 * hp])
        r = rz[:, :hp]
        z = rz[:, hp:]
        n = jnp.tanh(g[:, 2 * hp:] + r * (gh[:, 2 * hp:] + bhn))
        h_new = n + z * (h - n)              # == (1-z)*n + z*h, one fewer vmul
        if mask_tail:
            h_new = jnp.where(t0 + t < t_valid, h_new, h)       # padded-T tail
        if out_ref is not None:
            out_ref[t] = h_new.astype(out_ref.dtype)
        return h_new

    h_final = lax.fori_loop(0, tc, step, h_scr[...], unroll=unroll)
    h_scr[...] = h_final
    return h_final


# ----------------------------------------------------------------------------
# Pallas kernels
# ----------------------------------------------------------------------------
def gru_layer_kernel(x_ref, wih_ref, whh_ref, bgi_ref, bhn_ref, out_ref,
                     h_scr, gi_scr, *, hp, t_valid, mask_tail, unroll):
    @pl.when(pl.program_id(1) == 0)
    def _():
        h_scr[...] = jnp.zeros_like(h_scr)

    _run_chunk(x_ref, wih_ref, whh_ref, bgi_ref, bhn_ref, gi_scr, h_scr, hp,
               t_valid, mask_tail, unroll, out_ref=out_ref)


def gru_last_fc_kernel(x_ref, wih_ref, whh_ref, bgi_ref, bhn_ref, wfc_ref,
                       bfc_ref, out_ref, h_scr, gi_scr, *, hp, t_valid,
                       mask_tail, unroll):
    """Last GRU layer fused with the final Linear; only h_T @ w_fc + b_fc is emitted.

    NOTE: relies on the output block index being constant across the time axis
    (axis 1 of the grid); do not reorder grid axes without updating out_specs.
    """
    @pl.when(pl.program_id(1) == 0)
    def _():
        h_scr[...] = jnp.zeros_like(h_scr)

    h_final = _run_chunk(x_ref, wih_ref, whh_ref, bgi_ref, bhn_ref, gi_scr,
                         h_scr, hp, t_valid, mask_tail, unroll, out_ref=None)

    @pl.when(pl.program_id(1) == pl.num_programs(1) - 1)
    def _():
        out_ref[...] = (jnp.dot(h_final.astype(wfc_ref.dtype), wfc_ref[...],
                                preferred_element_type=jnp.float32)
                        + bfc_ref[...]).astype(out_ref.dtype)


# ----------------------------------------------------------------------------
# pallas_call wrappers
# ----------------------------------------------------------------------------
def _gru_layer_seq(x_tbd, wih, whh, b_gi, b_hn, *, time_chunk, t_valid, unroll):
    Tp, bp, dp = x_tbd.shape
    hp = whh.shape[0]
    tc = time_chunk
    nt = Tp // tc
    nb, bb = _batch_blocks(bp)
    mask_tail = (Tp != t_valid)

    kern = functools.partial(gru_layer_kernel, hp=hp, t_valid=t_valid,
                             mask_tail=mask_tail, unroll=unroll)
    return pl.pallas_call(
        kern,
        out_shape=jax.ShapeDtypeStruct((Tp, bp, hp), jnp.bfloat16),
        grid_spec=pltpu.PrefetchScalarGridSpec(
            num_scalar_prefetch=0,
            grid=(nb, nt),
            in_specs=[
                pl.BlockSpec((tc, bb, dp), lambda b, t: (t, b, 0)),
                _const_spec((dp, 3 * hp)),
                _const_spec((hp, 3 * hp)),
                _const_spec((1, 3 * hp)),
                _const_spec((1, hp)),
            ],
            out_specs=pl.BlockSpec((tc, bb, hp), lambda b, t: (t, b, 0)),
            scratch_shapes=[
                pltpu.VMEM((bb, hp), jnp.float32),          # carried hidden state
                pltpu.VMEM((tc, bb, 3 * hp), jnp.float32),  # precomputed gi chunk
            ]),
        compiler_params=pltpu.CompilerParams(
            dimension_semantics=("parallel", "arbitrary"),
            vmem_limit_bytes=_vmem_limit_bytes()),
    )(x_tbd, wih, whh, b_gi, b_hn)


def _gru_last_fc(x_tbd, wih, whh, b_gi, b_hn, w_fc, b_fc, *, time_chunk,
                 t_valid, unroll):
    Tp, bp, dp = x_tbd.shape
    hp = whh.shape[0]
    op = w_fc.shape[1]
    tc = time_chunk
    nt = Tp // tc
    nb, bb = _batch_blocks(bp)
    mask_tail = (Tp != t_valid)

    kern = functools.partial(gru_last_fc_kernel, hp=hp, t_valid=t_valid,
                             mask_tail=mask_tail, unroll=unroll)
    return pl.pallas_call(
        kern,
        out_shape=jax.ShapeDtypeStruct((bp, op), jnp.float32),
        grid_spec=pltpu.PrefetchScalarGridSpec(
            num_scalar_prefetch=0,
            grid=(nb, nt),
            in_specs=[
                pl.BlockSpec((tc, bb, dp), lambda b, t: (t, b, 0)),
                _const_spec((dp, 3 * hp)),
                _const_spec((hp, 3 * hp)),
                _const_spec((1, 3 * hp)),
                _const_spec((1, hp)),
                _const_spec((hp, op)),
                _const_spec((1, op)),
            ],
            out_specs=pl.BlockSpec((bb, op), lambda b, t: (b, 0)),
            scratch_shapes=[
                pltpu.VMEM((bb, hp), jnp.float32),
                pltpu.VMEM((tc, bb, 3 * hp), jnp.float32),
            ]),
        compiler_params=pltpu.CompilerParams(
            dimension_semantics=("parallel", "arbitrary"),
            vmem_limit_bytes=_vmem_limit_bytes()),
    )(x_tbd, wih, whh, b_gi, b_hn, w_fc, b_fc)


# ----------------------------------------------------------------------------
# Parameter packing (done ONCE, outside the per-forward jit path)
# ----------------------------------------------------------------------------
def _pack_gru_layer(w_ih, w_hh, b_ih, b_hh, dp, hp):
    d_in, h3 = w_ih.shape
    h = h3 // 3

    def pad_w(w, rows_to):
        blocks = [jnp.pad(w[:, g * h:(g + 1) * h],
                          ((0, rows_to - w.shape[0]), (0, hp - h)))
                  for g in range(3)]
        return jnp.concatenate(blocks, axis=1).astype(jnp.bfloat16)

    def pad_b(b, g):
        return jnp.pad(b[g * h:(g + 1) * h], (0, hp - h)).astype(jnp.float32)

    wih_p = pad_w(w_ih, dp)          # (dp, 3hp) bf16
    whh_p = pad_w(w_hh, hp)          # (hp, 3hp) bf16
    b_gi = jnp.concatenate([pad_b(b_ih, 0) + pad_b(b_hh, 0),
                            pad_b(b_ih, 1) + pad_b(b_hh, 1),
                            pad_b(b_ih, 2)])[None, :]           # (1, 3hp) f32
    b_hn = pad_b(b_hh, 2)[None, :]                              # (1, hp)  f32
    return wih_p, whh_p, b_gi, b_hn


def pack_params(params):
    """Pad / cast / fold weights once; call outside the per-step forward path."""
    _single_buffer_ok()   # resolve the Buffered(1) probe eagerly (not inside jit)
    H = params["layers"][0][1].shape[0]
    D = params["layers"][0][0].shape[0]
    O = params["w_fc"].shape[1]
    hp = _round_up(H, LANE)
    op = _round_up(O, LANE)
    layers = []
    d_in = D
    for (w_ih, w_hh, b_ih, b_hh) in params["layers"]:
        dp = _round_up(d_in, LANE)
        layers.append(_pack_gru_layer(w_ih, w_hh, b_ih, b_hh, dp, hp))
        d_in = H
    w_fc = jnp.pad(params["w_fc"], ((0, hp - H), (0, op - O))).astype(jnp.bfloat16)
    b_fc = jnp.pad(params["b_fc"], (0, op - O)).astype(jnp.float32)[None, :]
    return {"layers": layers, "w_fc": w_fc, "b_fc": b_fc}


# ----------------------------------------------------------------------------
# Full model forward (== PyTorch GRU.forward)
# ----------------------------------------------------------------------------
@functools.partial(jax.jit, static_argnames=("out_size", "time_chunk"))
def gru_model_forward(x_btd, packed, *, out_size, time_chunk=None):
    B, T, D = x_btd.shape
    layers = packed["layers"]
    dp0 = layers[0][0].shape[0]
    hp = layers[0][1].shape[0]
    w_fc = packed["w_fc"]
    b_fc = packed["b_fc"]
    op = w_fc.shape[1]

    bp = _round_up(B, SUBLANE)
    nb, bb = _batch_blocks(bp)

    single = bool(_SINGLE_BUFFER_OK)
    if time_chunk is None:
        tc = _choose_time_chunk(T, bb, max(dp0, hp), hp, op, single)
    else:
        tc = max(1, min(int(time_chunk), T))
    Tp = _round_up(T, tc)
    unroll = _pick_unroll(tc, bb, hp)

    # time-major, padded (batch -> sublane multiple, features -> lane multiple,
    # T -> multiple of tc; tail steps are masked inside the kernel), bf16 input
    x_p = jnp.transpose(x_btd, (1, 0, 2))
    x_p = jnp.pad(x_p, ((0, Tp - T), (0, bp - B), (0, dp0 - D))).astype(jnp.bfloat16)

    h_seq = x_p
    for (wih, whh, b_gi, b_hn) in layers[:-1]:
        h_seq = _gru_layer_seq(h_seq, wih, whh, b_gi, b_hn,
                               time_chunk=tc, t_valid=T, unroll=unroll)

    wih, whh, b_gi, b_hn = layers[-1]
    out_p = _gru_last_fc(h_seq, wih, whh, b_gi, b_hn, w_fc, b_fc,
                         time_chunk=tc, t_valid=T, unroll=unroll)
    return out_p[:B, :out_size]


# ----------------------------------------------------------------------------
# Deterministic parameter init (PyTorch-style uniform(-1/sqrt(H), 1/sqrt(H)))
# ----------------------------------------------------------------------------
def init_params(key, input_size, hidden_size, num_layers, output_size):
    k = 1.0 / math.sqrt(hidden_size)
    layers = []
    for l in range(num_layers):
        d_in = input_size if l == 0 else hidden_size
        key, k1, k2, k3, k4 = jax.random.split(key, 5)
        # stored transposed for (rows=batch/time, cols=gates) matmuls; gates [r|z|n]
        w_ih = jax.random.uniform(k1, (d_in, 3 * hidden_size), jnp.float32, -k, k)
        w_hh = jax.random.uniform(k2, (hidden_size, 3 * hidden_size), jnp.float32, -k, k)
        b_ih = jax.random.uniform(k3, (3 * hidden_size,), jnp.float32, -k, k)
        b_hh = jax.random.uniform(k4, (3 * hidden_size,), jnp.float32, -k, k)
        layers.append((w_ih, w_hh, b_ih, b_hh))
    key, k5, k6 = jax.random.split(key, 3)
    w_fc = jax.random.uniform(k5, (hidden_size, output_size), jnp.float32, -k, k)
    b_fc = jax.random.uniform(k6, (output_size,), jnp.float32, -k, k)
    return {"layers": layers, "w_fc": w_fc, "b_fc": b_fc}


# ----------------------------------------------------------------------------
# Pure-JAX reference with matching numerics (bf16 matmul operands, f32 math)
# ----------------------------------------------------------------------------
def reference_forward(x_btd, params):
    B, T, _ = x_btd.shape
    n_layers = len(params["layers"])
    h_seq = jnp.transpose(x_btd, (1, 0, 2)).astype(jnp.bfloat16)
    h = None
    for li, (w_ih, w_hh, b_ih, b_hh) in enumerate(params["layers"]):
        H = w_hh.shape[0]
        wih_b = w_ih.astype(jnp.bfloat16)
        whh_b = w_hh.astype(jnp.bfloat16)
        h = jnp.zeros((B, H), jnp.float32)
        outs = []
        for t in range(T):
            gi = jnp.dot(h_seq[t], wih_b, preferred_element_type=jnp.float32) + b_ih
            gh = jnp.dot(h.astype(jnp.bfloat16), whh_b,
                         preferred_element_type=jnp.float32)
            r = jax.nn.sigmoid(gi[:, :H] + gh[:, :H] + b_hh[:H])
            z = jax.nn.sigmoid(gi[:, H:2 * H] + gh[:, H:2 * H] + b_hh[H:2 * H])
            n = jnp.tanh(gi[:, 2 * H:] + r * (gh[:, 2 * H:] + b_hh[2 * H:]))
            h = (1.0 - z) * n + z * h
            outs.append(h)
        if li < n_layers - 1:
            h_seq = jnp.stack(outs, 0).astype(jnp.bfloat16)
    return (jnp.dot(h.astype(jnp.bfloat16), params["w_fc"].astype(jnp.bfloat16),
                    preferred_element_type=jnp.float32) + params["b_fc"])


if __name__ == "__main__":
    batch, seq_len = 2, 10
    input_size, hidden_size, num_layers, output_size = 16, 32, 2, 4

    key = jax.random.PRNGKey(0)
    key, kx, kp = jax.random.split(key, 3)
    x = jax.random.normal(kx, (batch, seq_len, input_size), jnp.float32)
    params = init_params(kp, input_size, hidden_size, num_layers, output_size)
    packed = pack_params(params)   # one-time weight padding / bias folding

    ref = reference_forward(x, params)

    # time_chunk=4 with T=10 -> 3 chunks incl. a masked tail (exercises h carry
    # across the pipelined grid + padded-T masking path)
    out = gru_model_forward(x, packed, out_size=output_size, time_chunk=4)
    out = jax.block_until_ready(out)
    assert out.shape == (batch, output_size)
    err = float(jnp.max(jnp.abs(out - ref)))
    assert err < 2e-3, f"Pallas GRU mismatch vs JAX reference (chunked): {err}"

    # default path: VMEM-budget-sized time chunk (single chunk at this T)
    out_auto = gru_model_forward(x, packed, out_size=output_size)
    out_auto = jax.block_until_ready(out_auto)
    err_auto = float(jnp.max(jnp.abs(out_auto - ref)))
    assert err_auto < 2e-3, f"Pallas GRU mismatch vs JAX reference (auto): {err_auto}"

    print("KERNEL_OK")
</pallas_src>

<mosaic_0001>
module attributes {stable_mosaic.version = 11 : i64} {
  func.func @k(%arg0: i32, %arg1: memref<8x128xf32, #tpu.memory_space<vmem>>, %arg2: memref<8x128xf32, #tpu.memory_space<vmem>>) attributes {dimension_semantics = [#tpu.dimension_semantics<arbitrary>], iteration_bounds = array<i64: 2>, scalar_prefetch = 0 : i64, scratch_operands = 0 : i64, tpu.core_type = #tpu.core_type<tc>, window_params = [{pipeline_mode = #tpu.pipeline_mode<synchronous>, transform_indices = @transform_0, window_bounds = array<i64: 8, 128>}, {transform_indices = @transform_1, window_bounds = array<i64: 8, 128>}]} {
    %c0 = arith.constant 0 : index
    %c0_0 = arith.constant 0 : index
    %0 = vector.load %arg1[%c0, %c0_0] : memref<8x128xf32, #tpu.memory_space<vmem>>, vector<8x128xf32>
    %cst = arith.constant 1.000000e+00 : f32
    %1 = vector.broadcast %cst : f32 to vector<8x128xf32>
    %2 = arith.addf %0, %1 : vector<8x128xf32>
    %c0_1 = arith.constant 0 : index
    %c0_2 = arith.constant 0 : index
    %3 = vector.load %arg2[%c0_1, %c0_2] : memref<8x128xf32, #tpu.memory_space<vmem>>, vector<8x128xf32>
    tpu.vector_store %arg2[%c0_1, %c0_2], %2 {strides = array<i32>} : memref<8x128xf32, #tpu.memory_space<vmem>>, vector<8x128xf32>,
    return
  }
  func.func @transform_0(%arg0: i32) -> (i32, i32) {
    %c0_i32 = arith.constant 0 : i32
    %c0_i32_0 = arith.constant 0 : i32
    return %arg0, %c0_i32 : i32, i32
  }
  func.func @transform_1(%arg0: i32) -> (i32, i32) {
    %c0_i32 = arith.constant 0 : i32
    %c0_i32_0 = arith.constant 0 : i32
    return %arg0, %c0_i32 : i32, i32
  }
}

module attributes {stable_mosaic.version = 11 : i64} {
  func.func @gru_last_fc_kernel(%arg0: i32, %arg1: i32, %arg2: memref<4x8x128xbf16, #tpu.memory_space<vmem>>, %arg3: memref<128x384xbf16, #tpu.memory_space<vmem>>, %arg4: memref<128x384xbf16, #tpu.memory_space<vmem>>, %arg5: memref<1x384xf32, #tpu.memory_space<vmem>>, %arg6: memref<1x128xf32, #tpu.memory_space<vmem>>, %arg7: memref<128x128xbf16, #tpu.memory_space<vmem>>, %arg8: memref<1x128xf32, #tpu.memory_space<vmem>>, %arg9: memref<8x128xf32, #tpu.memory_space<vmem>>, %arg10: memref<8x128xf32, #tpu.memory_space<vmem>>, %arg11: memref<4x8x384xf32, #tpu.memory_space<vmem>>) attributes {dimension_semantics = [#tpu.dimension_semantics<parallel>, #tpu.dimension_semantics<arbitrary>], iteration_bounds = array<i64: 1, 3>, scalar_prefetch = 0 : i64, scratch_operands = 2 : i64, tpu.core_type = #tpu.core_type<tc>, window_params = [{transform_indices = @transform_0, window_bounds = array<i64: 4, 8, 128>}, {pipeline_mode = #tpu.pipeline_mode<synchronous>, transform_indices = @transform_1, window_bounds = array<i64: 128, 384>}, {pipeline_mode = #tpu.pipeline_mode<synchronous>, transform_indices = @transform_2, window_bounds = array<i64: 128, 384>}, {pipeline_mode = #tpu.pipeline_mode<synchronous>, transform_indices = @transform_3, window_bounds = array<i64: 1, 384>}, {pipeline_mode = #tpu.pipeline_mode<synchronous>, transform_indices = @transform_4, window_bounds = array<i64: 1, 128>}, {pipeline_mode = #tpu.pipeline_mode<synchronous>, transform_indices = @transform_5, window_bounds = array<i64: 128, 128>}, {pipeline_mode = #tpu.pipeline_mode<synchronous>, transform_indices = @transform_6, window_bounds = array<i64: 1, 128>}, {transform_indices = @transform_7, window_bounds = array<i64: 8, 128>}]} {
    %c0_i32 = arith.constant 0 : i32
    %0 = arith.cmpi eq, %arg1, %c0_i32 : i32
    %1 = arith.extui %0 : i1 to i32
    %c0_i32_0 = arith.constant 0 : i32
    %2 = arith.cmpi ne, %1, %c0_i32_0 : i32
    scf.if %2 {
      %cst_47 = arith.constant 0.000000e+00 : f32
      %133 = vector.broadcast %cst_47 : f32 to vector<8x128xf32>
      %c0_48 = arith.constant 0 : index
      %c0_49 = arith.constant 0 : index
      %134 = vector.load %arg10[%c0_48, %c0_49] : memref<8x128xf32, #tpu.memory_space<vmem>>, vector<8x128xf32>
      tpu.vector_store %arg10[%c0_48, %c0_49], %133 {strides = array<i32>} : memref<8x128xf32, #tpu.memory_space<vmem>>, vector<8x128xf32>,
    } else {
    }
    %c0 = arith.constant 0 : index
    %c0_1 = arith.constant 0 : index
    %c0_2 = arith.constant 0 : index
    %3 = vector.load %arg2[%c0, %c0_1, %c0_2] : memref<4x8x128xbf16, #tpu.memory_space<vmem>>, vector<4x8x128xbf16>
    %4 = vector.shape_cast %3 : vector<4x8x128xbf16> to vector<32x128xbf16>
    %c0_3 = arith.constant 0 : index
    %c0_4 = arith.constant 0 : index
    %5 = vector.load %arg3[%c0_3, %c0_4] : memref<128x384xbf16, #tpu.memory_space<vmem>>, vector<128x384xbf16>
    %cst = arith.constant dense<0.000000e+00> : vector<32x384xf32>
    %6 = tpu.matmul %4, %5, %cst {dimension_numbers = #tpu.dot_dimension_numbers<[1], [0], [0], [1], [0, 0, 1, 1], [], []>} : vector<32x128xbf16>, vector<128x384xbf16>, vector<32x384xf32> -> vector<32x384xf32>
    %c0_5 = arith.constant 0 : index
    %c0_6 = arith.constant 0 : index
    %7 = vector.load %arg5[%c0_5, %c0_6] : memref<1x384xf32, #tpu.memory_space<vmem>>, vector<1x384xf32>
    %8 = vector.broadcast %7 : vector<1x384xf32> to vector<32x384xf32>
    %9 = arith.addf %6, %8 : vector<32x384xf32>
    %10 = vector.shape_cast %9 : vector<32x384xf32> to vector<4x8x384xf32>
    %c0_7 = arith.constant 0 : index
    %c0_8 = arith.constant 0 : index
    %c0_9 = arith.constant 0 : index
    %11 = vector.load %arg11[%c0_7, %c0_8, %c0_9] : memref<4x8x384xf32, #tpu.memory_space<vmem>>, vector<4x8x384xf32>
    tpu.vector_store %arg11[%c0_7, %c0_8, %c0_9], %10 {strides = array<i32>} : memref<4x8x384xf32, #tpu.memory_space<vmem>>, vector<4x8x384xf32>,
    %c0_10 = arith.constant 0 : index
    %c0_11 = arith.constant 0 : index
    %12 = vector.load %arg6[%c0_10, %c0_11] : memref<1x128xf32, #tpu.memory_space<vmem>>, vector<1x128xf32>
    %13 = vector.shape_cast %12 : vector<1x128xf32> to vector<1x128xf32>
    %14 = vector.broadcast %13 : vector<1x128xf32> to vector<8x128xf32>
    %c4_i32 = arith.constant 4 : i32
    %15 = arith.muli %arg1, %c4_i32 : i32
    %c0_12 = arith.constant 0 : index
    %c0_13 = arith.constant 0 : index
    %16 = vector.load %arg10[%c0_12, %c0_13] : memref<8x128xf32, #tpu.memory_space<vmem>>, vector<8x128xf32>
    %c0_i32_14 = arith.constant 0 : i32
    %17 = arith.truncf %16 : vector<8x128xf32> to vector<8x128xbf16>
    %c0_15 = arith.constant 0 : index
    %c0_16 = arith.constant 0 : index
    %18 = vector.load %arg4[%c0_15, %c0_16] : memref<128x384xbf16, #tpu.memory_space<vmem>>, vector<128x384xbf16>
    %cst_17 = arith.constant dense<0.000000e+00> : vector<8x384xf32>
    %19 = tpu.matmul %17, %18, %cst_17 {dimension_numbers = #tpu.dot_dimension_numbers<[1], [0], [0], [1], [0, 0, 1, 1], [], []>} : vector<8x128xbf16>, vector<128x384xbf16>, vector<8x384xf32> -> vector<8x384xf32>
    %20 = arith.index_cast %c0_i32_14 : i32 to index
    %c0_18 = arith.constant 0 : index
    %c0_19 = arith.constant 0 : index
    %21 = vector.load %arg11[%20, %c0_18, %c0_19] : memref<4x8x384xf32, #tpu.memory_space<vmem>>, vector<1x8x384xf32>
    %22 = vector.shape_cast %21 : vector<1x8x384xf32> to vector<8x384xf32>
    %23 = vector.extract_strided_slice %22 {offsets = [0, 0], sizes = [8, 256], strides = [1, 1]} : vector<8x384xf32> to vector<8x256xf32>
    %24 = vector.extract_strided_slice %19 {offsets = [0, 0], sizes = [8, 256], strides = [1, 1]} : vector<8x384xf32> to vector<8x256xf32>
    %25 = arith.addf %23, %24 : vector<8x256xf32>
    %26 = arith.negf %25 : vector<8x256xf32>
    %27 = math.exp %26 : vector<8x256xf32>
    %cst_20 = arith.constant 1.000000e+00 : f32
    %28 = vector.broadcast %cst_20 : f32 to vector<8x256xf32>
    %29 = arith.addf %28, %27 : vector<8x256xf32>
    %30 = arith.divf %28, %29 : vector<8x256xf32>
    %31 = vector.extract_strided_slice %30 {offsets = [0, 0], sizes = [8, 128], strides = [1, 1]} : vector<8x256xf32> to vector<8x128xf32>
    %32 = vector.extract_strided_slice %30 {offsets = [0, 128], sizes = [8, 128], strides = [1, 1]} : vector<8x256xf32> to vector<8x128xf32>
    %33 = vector.extract_strided_slice %22 {offsets = [0, 256], sizes = [8, 128], strides = [1, 1]} : vector<8x384xf32> to vector<8x128xf32>
    %34 = vector.extract_strided_slice %19 {offsets = [0, 256], sizes = [8, 128], strides = [1, 1]} : vector<8x384xf32> to vector<8x128xf32>
    %35 = arith.addf %34, %14 : vector<8x128xf32>
    %36 = arith.mulf %31, %35 : vector<8x128xf32>
    %37 = arith.addf %33, %36 : vector<8x128xf32>
    %38 = math.tanh %37 : vector<8x128xf32>
    %39 = arith.subf %16, %38 : vector<8x128xf32>
    %40 = arith.mulf %32, %39 : vector<8x128xf32>
    %41 = arith.addf %38, %40 : vector<8x128xf32>
    %42 = arith.addi %15, %c0_i32_14 : i32
    %c10_i32 = arith.constant 10 : i32
    %43 = arith.cmpi slt, %42, %c10_i32 : i32
    %44 = arith.select %43, %41, %16 : vector<8x128xf32>
    %c1_i32 = arith.constant 1 : i32
    %45 = arith.truncf %44 : vector<8x128xf32> to vector<8x128xbf16>
    %c0_21 = arith.constant 0 : index
    %c0_22 = arith.constant 0 : index
    %46 = vector.load %arg4[%c0_21, %c0_22] : memref<128x384xbf16, #tpu.memory_space<vmem>>, vector<128x384xbf16>
    %cst_23 = arith.constant dense<0.000000e+00> : vector<8x384xf32>
    %47 = tpu.matmul %45, %46, %cst_23 {dimension_numbers = #tpu.dot_dimension_numbers<[1], [0], [0], [1], [0, 0, 1, 1], [], []>} : vector<8x128xbf16>, vector<128x384xbf16>, vector<8x384xf32> -> vector<8x384xf32>
    %48 = arith.index_cast %c1_i32 : i32 to index
    %c0_24 = arith.constant 0 : index
    %c0_25 = arith.constant 0 : index
    %49 = vector.load %arg11[%48, %c0_24, %c0_25] : memref<4x8x384xf32, #tpu.memory_space<vmem>>, vector<1x8x384xf32>
    %50 = vector.shape_cast %49 : vector<1x8x384xf32> to vector<8x384xf32>
    %51 = vector.extract_strided_slice %50 {offsets = [0, 0], sizes = [8, 256], strides = [1, 1]} : vector<8x384xf32> to vector<8x256xf32>
    %52 = vector.extract_strided_slice %47 {offsets = [0, 0], sizes = [8, 256], strides = [1, 1]} : vector<8x384xf32> to vector<8x256xf32>
    %53 = arith.addf %51, %52 : vector<8x256xf32>
    %54 = arith.negf %53 : vector<8x256xf32>
    %55 = math.exp %54 : vector<8x256xf32>
    %cst_26 = arith.constant 1.000000e+00 : f32
    %56 = vector.broadcast %cst_26 : f32 to vector<8x256xf32>
    %57 = arith.addf %56, %55 : vector<8x256xf32>
    %58 = arith.divf %56, %57 : vector<8x256xf32>
    %59 = vector.extract_strided_slice %58 {offsets = [0, 0], sizes = [8, 128], strides = [1, 1]} : vector<8x256xf32> to vector<8x128xf32>
    %60 = vector.extract_strided_slice %58 {offsets = [0, 128], sizes = [8, 128], strides = [1, 1]} : vector<8x256xf32> to vector<8x128xf32>
    %61 = vector.extract_strided_slice %50 {offsets = [0, 256], sizes = [8, 128], strides = [1, 1]} : vector<8x384xf32> to vector<8x128xf32>
    %62 = vector.extract_strided_slice %47 {offsets = [0, 256], sizes = [8, 128], strides = [1, 1]} : vector<8x384xf32> to vector<8x128xf32>
    %63 = arith.addf %62, %14 : vector<8x128xf32>
    %64 = arith.mulf %59, %63 : vector<8x128xf32>
    %65 = arith.addf %61, %64 : vector<8x128xf32>
    %66 = math.tanh %65 : vector<8x128xf32>
    %67 = arith.subf %44, %66 : vector<8x128xf32>
    %68 = arith.mulf %60, %67 : vector<8x128xf32>
    %69 = arith.addf %66, %68 : vector<8x128xf32>
    %70 = arith.addi %15, %c1_i32 : i32
    %c10_i32_27 = arith.constant 10 : i32
    %71 = arith.cmpi slt, %70, %c10_i32_27 : i32
    %72 = arith.select %71, %69, %44 : vector<8x128xf32>
    %c2_i32 = arith.constant 2 : i32
    %73 = arith.truncf %72 : vector<8x128xf32> to vector<8x128xbf16>
    %c0_28 = arith.constant 0 : index
    %c0_29 = arith.constant 0 : index
    %74 = vector.load %arg4[%c0_28, %c0_29] : memref<128x384xbf16, #tpu.memory_space<vmem>>, vector<128x384xbf16>
    %cst_30 = arith.constant dense<0.000000e+00> : vector<8x384xf32>
    %75 = tpu.matmul %73, %74, %cst_30 {dimension_numbers = #tpu.dot_dimension_numbers<[1], [0], [0], [1], [0, 0, 1, 1], [], []>} : vector<8x128xbf16>, vector<128x384xbf16>, vector<8x384xf32> -> vector<8x384xf32>
    %76 = arith.index_cast %c2_i32 : i32 to index
    %c0_31 = arith.constant 0 : index
    %c0_32 = arith.constant 0 : index
    %77 = vector.load %arg11[%76, %c0_31, %c0_32] : memref<4x8x384xf32, #tpu.memory_space<vmem>>, vector<1x8x384xf32>
    %78 = vector.shape_cast %77 : vector<1x8x384xf32> to vector<8x384xf32>
    %79 = vector.extract_strided_slice %78 {offsets = [0, 0], sizes = [8, 256], strides = [1, 1]} : vector<8x384xf32> to vector<8x256xf32>
    %80 = vector.extract_strided_slice %75 {offsets = [0, 0], sizes = [8, 256], strides = [1, 1]} : vector<8x384xf32> to vector<8x256xf32>
    %81 = arith.addf %79, %80 : vector<8x256xf32>
    %82 = arith.negf %81 : vector<8x256xf32>
    %83 = math.exp %82 : vector<8x256xf32>
    %cst_33 = arith.constant 1.000000e+00 : f32
    %84 = vector.broadcast %cst_33 : f32 to vector<8x256xf32>
    %85 = arith.addf %84, %83 : vector<8x256xf32>
    %86 = arith.divf %84, %85 : vector<8x256xf32>
    %87 = vector.extract_strided_slice %86 {offsets = [0, 0], sizes = [8, 128], strides = [1, 1]} : vector<8x256xf32> to vector<8x128xf32>
    %88 = vector.extract_strided_slice %86 {offsets = [0, 128], sizes = [8, 128], strides = [1, 1]} : vector<8x256xf32> to vector<8x128xf32>
    %89 = vector.extract_strided_slice %78 {offsets = [0, 256], sizes = [8, 128], strides = [1, 1]} : vector<8x384xf32> to vector<8x128xf32>
    %90 = vector.extract_strided_slice %75 {offsets = [0, 256], sizes = [8, 128], strides = [1, 1]} : vector<8x384xf32> to vector<8x128xf32>
    %91 = arith.addf %90, %14 : vector<8x128xf32>
    %92 = arith.mulf %87, %91 : vector<8x128xf32>
    %93 = arith.addf %89, %92 : vector<8x128xf32>
    %94 = math.tanh %93 : vector<8x128xf32>
    %95 = arith.subf %72, %94 : vector<8x128xf32>
    %96 = arith.mulf %88, %95 : vector<8x128xf32>
    %97 = arith.addf %94, %96 : vector<8x128xf32>
    %98 = arith.addi %15, %c2_i32 : i32
    %c10_i32_34 = arith.constant 10 : i32
    %99 = arith.cmpi slt, %98, %c10_i32_34 : i32
    %100 = arith.select %99, %97, %72 : vector<8x128xf32>
    %c3_i32 = arith.constant 3 : i32
    %101 = arith.truncf %100 : vector<8x128xf32> to vector<8x128xbf16>
    %c0_35 = arith.constant 0 : index
    %c0_36 = arith.constant 0 : index
    %102 = vector.load %arg4[%c0_35, %c0_36] : memref<128x384xbf16, #tpu.memory_space<vmem>>, vector<128x384xbf16>
    %cst_37 = arith.constant dense<0.000000e+00> : vector<8x384xf32>
    %103 = tpu.matmul %101, %102, %cst_37 {dimension_numbers = #tpu.dot_dimension_numbers<[1], [0], [0], [1], [0, 0, 1, 1], [], []>} : vector<8x128xbf16>, vector<128x384xbf16>, vector<8x384xf32> -> vector<8x384xf32>
    %104 = arith.index_cast %c3_i32 : i32 to index
    %c0_38 = arith.constant 0 : index
    %c0_39 = arith.constant 0 : index
    %105 = vector.load %arg11[%104, %c0_38, %c0_39] : memref<4x8x384xf32, #tpu.memory_space<vmem>>, vector<1x8x384xf32>
    %106 = vector.shape_cast %105 : vector<1x8x384xf32> to vector<8x384xf32>
    %107 = vector.extract_strided_slice %106 {offsets = [0, 0], sizes = [8, 256], strides = [1, 1]} : vector<8x384xf32> to vector<8x256xf32>
    %108 = vector.extract_strided_slice %103 {offsets = [0, 0], sizes = [8, 256], strides = [1, 1]} : vector<8x384xf32> to vector<8x256xf32>
    %109 = arith.addf %107, %108 : vector<8x256xf32>
    %110 = arith.negf %109 : vector<8x256xf32>
    %111 = math.exp %110 : vector<8x256xf32>
    %cst_40 = arith.constant 1.000000e+00 : f32
    %112 = vector.broadcast %cst_40 : f32 to vector<8x256xf32>
    %113 = arith.addf %112, %111 : vector<8x256xf32>
    %114 = arith.divf %112, %113 : vector<8x256xf32>
    %115 = vector.extract_strided_slice %114 {offsets = [0, 0], sizes = [8, 128], strides = [1, 1]} : vector<8x256xf32> to vector<8x128xf32>
    %116 = vector.extract_strided_slice %114 {offsets = [0, 128], sizes = [8, 128], strides = [1, 1]} : vector<8x256xf32> to vector<8x128xf32>
    %117 = vector.extract_strided_slice %106 {offsets = [0, 256], sizes = [8, 128], strides = [1, 1]} : vector<8x384xf32> to vector<8x128xf32>
    %118 = vector.extract_strided_slice %103 {offsets = [0, 256], sizes = [8, 128], strides = [1, 1]} : vector<8x384xf32> to vector<8x128xf32>
    %119 = arith.addf %118, %14 : vector<8x128xf32>
    %120 = arith.mulf %115, %119 : vector<8x128xf32>
    %121 = arith.addf %117, %120 : vector<8x128xf32>
    %122 = math.tanh %121 : vector<8x128xf32>
    %123 = arith.subf %100, %122 : vector<8x128xf32>
    %124 = arith.mulf %116, %123 : vector<8x128xf32>
    %125 = arith.addf %122, %124 : vector<8x128xf32>
    %126 = arith.addi %15, %c3_i32 : i32
    %c10_i32_41 = arith.constant 10 : i32
    %127 = arith.cmpi slt, %126, %c10_i32_41 : i32
    %128 = arith.select %127, %125, %100 : vector<8x128xf32>
    %c4_i32_42 = arith.constant 4 : i32
    %c0_43 = arith.constant 0 : index
    %c0_44 = arith.constant 0 : index
    %129 = vector.load %arg10[%c0_43, %c0_44] : memref<8x128xf32, #tpu.memory_space<vmem>>, vector<8x128xf32>
    tpu.vector_store %arg10[%c0_43, %c0_44], %128 {strides = array<i32>} : memref<8x128xf32, #tpu.memory_space<vmem>>, vector<8x128xf32>,
    %c2_i32_45 = arith.constant 2 : i32
    %130 = arith.cmpi eq, %arg1, %c2_i32_45 : i32
    %131 = arith.extui %130 : i1 to i32
    %c0_i32_46 = arith.constant 0 : i32
    %132 = arith.cmpi ne, %131, %c0_i32_46 : i32
    scf.if %132 {
      %133 = arith.truncf %128 : vector<8x128xf32> to vector<8x128xbf16>
      %c0_47 = arith.constant 0 : index
      %c0_48 = arith.constant 0 : index
      %134 = vector.load %arg7[%c0_47, %c0_48] : memref<128x128xbf16, #tpu.memory_space<vmem>>, vector<128x128xbf16>
      %cst_49 = arith.constant dense<0.000000e+00> : vector<8x128xf32>
      %135 = tpu.matmul %133, %134, %cst_49 {dimension_numbers = #tpu.dot_dimension_numbers<[1], [0], [0], [1], [0, 0, 1, 1], [], []>} : vector<8x128xbf16>, vector<128x128xbf16>, vector<8x128xf32> -> vector<8x128xf32>
      %c0_50 = arith.constant 0 : index
      %c0_51 = arith.constant 0 : index
      %136 = vector.load %arg8[%c0_50, %c0_51] : memref<1x128xf32, #tpu.memory_space<vmem>>, vector<1x128xf32>
      %137 = vector.broadcast %136 : vector<1x128xf32> to vector<8x128xf32>
      %138 = arith.addf %135, %137 : vector<8x128xf32>
      %c0_52 = arith.constant 0 : index
      %c0_53 = arith.constant 0 : index
      %139 = vector.load %arg9[%c0_52, %c0_53] : memref<8x128xf32, #tpu.memory_space<vmem>>, vector<8x128xf32>
      tpu.vector_store %arg9[%c0_52, %c0_53], %138 {strides = array<i32>} : memref<8x128xf32, #tpu.memory_space<vmem>>, vector<8x128xf32>,
    } else {
    }
    return
  }
  func.func @transform_0(%arg0: i32, %arg1: i32) -> (i32, i32, i32) {
    %c0_i32 = arith.constant 0 : i32
    %c0_i32_0 = arith.constant 0 : i32
    return %arg1, %arg0, %c0_i32 : i32, i32, i32
  }
  func.func @transform_1(%arg0: i32, %arg1: i32) -> (i32, i32) {
    %c0_i32 = arith.constant 0 : i32
    %c0_i32_0 = arith.constant 0 : i32
    %c0_i32_1 = arith.constant 0 : i32
    return %c0_i32, %c0_i32_0 : i32, i32
  }
  func.func @transform_2(%arg0: i32, %arg1: i32) -> (i32, i32) {
    %c0_i32 = arith.constant 0 : i32
    %c0_i32_0 = arith.constant 0 : i32
    %c0_i32_1 = arith.constant 0 : i32
    return %c0_i32, %c0_i32_0 : i32, i32
  }
  func.func @transform_3(%arg0: i32, %arg1: i32) -> (i32, i32) {
    %c0_i32 = arith.constant 0 : i32
    %c0_i32_0 = arith.constant 0 : i32
    %c0_i32_1 = arith.constant 0 : i32
    return %c0_i32, %c0_i32_0 : i32, i32
  }
  func.func @transform_4(%arg0: i32, %arg1: i32) -> (i32, i32) {
    %c0_i32 = arith.constant 0 : i32
    %c0_i32_0 = arith.constant 0 : i32
    %c0_i32_1 = arith.constant 0 : i32
    return %c0_i32, %c0_i32_0 : i32, i32
  }
  func.func @transform_5(%arg0: i32, %arg1: i32) -> (i32, i32) {
    %c0_i32 = arith.constant 0 : i32
    %c0_i32_0 = arith.constant 0 : i32
    %c0_i32_1 = arith.constant 0 : i32
    return %c0_i32, %c0_i32_0 : i32, i32
  }
  func.func @transform_6(%arg0: i32, %arg1: i32) -> (i32, i32) {
    %c0_i32 = arith.constant 0 : i32
    %c0_i32_0 = arith.constant 0 : i32
    %c0_i32_1 = arith.constant 0 : i32
    return %c0_i32, %c0_i32_0 : i32, i32
  }
  func.func @transform_7(%arg0: i32, %arg1: i32) -> (i32, i32) {
    %c0_i32 = arith.constant 0 : i32
    %c0_i32_0 = arith.constant 0 : i32
    return %arg0, %c0_i32 : i32, i32
  }
}

module attributes {stable_mosaic.version = 11 : i64} {
  func.func @gru_layer_kernel(%arg0: i32, %arg1: i32, %arg2: memref<4x8x128xbf16, #tpu.memory_space<vmem>>, %arg3: memref<128x384xbf16, #tpu.memory_space<vmem>>, %arg4: memref<128x384xbf16, #tpu.memory_space<vmem>>, %arg5: memref<1x384xf32, #tpu.memory_space<vmem>>, %arg6: memref<1x128xf32, #tpu.memory_space<vmem>>, %arg7: memref<4x8x128xbf16, #tpu.memory_space<vmem>>, %arg8: memref<8x128xf32, #tpu.memory_space<vmem>>, %arg9: memref<4x8x384xf32, #tpu.memory_space<vmem>>) attributes {dimension_semantics = [#tpu.dimension_semantics<parallel>, #tpu.dimension_semantics<arbitrary>], iteration_bounds = array<i64: 1, 3>, scalar_prefetch = 0 : i64, scratch_operands = 2 : i64, tpu.core_type = #tpu.core_type<tc>, window_params = [{transform_indices = @transform_0, window_bounds = array<i64: 4, 8, 128>}, {pipeline_mode = #tpu.pipeline_mode<synchronous>, transform_indices = @transform_1, window_bounds = array<i64: 128, 384>}, {pipeline_mode = #tpu.pipeline_mode<synchronous>, transform_indices = @transform_2, window_bounds = array<i64: 128, 384>}, {pipeline_mode = #tpu.pipeline_mode<synchronous>, transform_indices = @transform_3, window_bounds = array<i64: 1, 384>}, {pipeline_mode = #tpu.pipeline_mode<synchronous>, transform_indices = @transform_4, window_bounds = array<i64: 1, 128>}, {transform_indices = @transform_5, window_bounds = array<i64: 4, 8, 128>}]} {
    %c0_i32 = arith.constant 0 : i32
    %0 = arith.cmpi eq, %arg1, %c0_i32 : i32
    %1 = arith.extui %0 : i1 to i32
    %c0_i32_0 = arith.constant 0 : i32
    %2 = arith.cmpi ne, %1, %c0_i32_0 : i32
    scf.if %2 {
      %cst_53 = arith.constant 0.000000e+00 : f32
      %150 = vector.broadcast %cst_53 : f32 to vector<8x128xf32>
      %c0_54 = arith.constant 0 : index
      %c0_55 = arith.constant 0 : index
      %151 = vector.load %arg8[%c0_54, %c0_55] : memref<8x128xf32, #tpu.memory_space<vmem>>, vector<8x128xf32>
      tpu.vector_store %arg8[%c0_54, %c0_55], %150 {strides = array<i32>} : memref<8x128xf32, #tpu.memory_space<vmem>>, vector<8x128xf32>,
    } else {
    }
    %c0 = arith.constant 0 : index
    %c0_1 = arith.constant 0 : index
    %c0_2 = arith.constant 0 : index
    %3 = vector.load %arg2[%c0, %c0_1, %c0_2] : memref<4x8x128xbf16, #tpu.memory_space<vmem>>, vector<4x8x128xbf16>
    %4 = vector.shape_cast %3 : vector<4x8x128xbf16> to vector<32x128xbf16>
    %c0_3 = arith.constant 0 : index
    %c0_4 = arith.constant 0 : index
    %5 = vector.load %arg3[%c0_3, %c0_4] : memref<128x384xbf16, #tpu.memory_space<vmem>>, vector<128x384xbf16>
    %cst = arith.constant dense<0.000000e+00> : vector<32x384xf32>
    %6 = tpu.matmul %4, %5, %cst {dimension_numbers = #tpu.dot_dimension_numbers<[1], [0], [0], [1], [0, 0, 1, 1], [], []>} : vector<32x128xbf16>, vector<128x384xbf16>, vector<32x384xf32> -> vector<32x384xf32>
    %c0_5 = arith.constant 0 : index
    %c0_6 = arith.constant 0 : index
    %7 = vector.load %arg5[%c0_5, %c0_6] : memref<1x384xf32, #tpu.memory_space<vmem>>, vector<1x384xf32>
    %8 = vector.broadcast %7 : vector<1x384xf32> to vector<32x384xf32>
    %9 = arith.addf %6, %8 : vector<32x384xf32>
    %10 = vector.shape_cast %9 : vector<32x384xf32> to vector<4x8x384xf32>
    %c0_7 = arith.constant 0 : index
    %c0_8 = arith.constant 0 : index
    %c0_9 = arith.constant 0 : index
    %11 = vector.load %arg9[%c0_7, %c0_8, %c0_9] : memref<4x8x384xf32, #tpu.memory_space<vmem>>, vector<4x8x384xf32>
    tpu.vector_store %arg9[%c0_7, %c0_8, %c0_9], %10 {strides = array<i32>} : memref<4x8x384xf32, #tpu.memory_space<vmem>>, vector<4x8x384xf32>,
    %c0_10 = arith.constant 0 : index
    %c0_11 = arith.constant 0 : index
    %12 = vector.load %arg6[%c0_10, %c0_11] : memref<1x128xf32, #tpu.memory_space<vmem>>, vector<1x128xf32>
    %13 = vector.shape_cast %12 : vector<1x128xf32> to vector<1x128xf32>
    %14 = vector.broadcast %13 : vector<1x128xf32> to vector<8x128xf32>
    %c4_i32 = arith.constant 4 : i32
    %15 = arith.muli %arg1, %c4_i32 : i32
    %c0_12 = arith.constant 0 : index
    %c0_13 = arith.constant 0 : index
    %16 = vector.load %arg8[%c0_12, %c0_13] : memref<8x128xf32, #tpu.memory_space<vmem>>, vector<8x128xf32>
    %c0_i32_14 = arith.constant 0 : i32
    %17 = arith.truncf %16 : vector<8x128xf32> to vector<8x128xbf16>
    %c0_15 = arith.constant 0 : index
    %c0_16 = arith.constant 0 : index
    %18 = vector.load %arg4[%c0_15, %c0_16] : memref<128x384xbf16, #tpu.memory_space<vmem>>, vector<128x384xbf16>
    %cst_17 = arith.constant dense<0.000000e+00> : vector<8x384xf32>
    %19 = tpu.matmul %17, %18, %cst_17 {dimension_numbers = #tpu.dot_dimension_numbers<[1], [0], [0], [1], [0, 0, 1, 1], [], []>} : vector<8x128xbf16>, vector<128x384xbf16>, vector<8x384xf32> -> vector<8x384xf32>
    %20 = arith.index_cast %c0_i32_14 : i32 to index
    %c0_18 = arith.constant 0 : index
    %c0_19 = arith.constant 0 : index
    %21 = vector.load %arg9[%20, %c0_18, %c0_19] : memref<4x8x384xf32, #tpu.memory_space<vmem>>, vector<1x8x384xf32>
    %22 = vector.shape_cast %21 : vector<1x8x384xf32> to vector<8x384xf32>
    %23 = vector.extract_strided_slice %22 {offsets = [0, 0], sizes = [8, 256], strides = [1, 1]} : vector<8x384xf32> to vector<8x256xf32>
    %24 = vector.extract_strided_slice %19 {offsets = [0, 0], sizes = [8, 256], strides = [1, 1]} : vector<8x384xf32> to vector<8x256xf32>
    %25 = arith.addf %23, %24 : vector<8x256xf32>
    %26 = arith.negf %25 : vector<8x256xf32>
    %27 = math.exp %26 : vector<8x256xf32>
    %cst_20 = arith.constant 1.000000e+00 : f32
    %28 = vector.broadcast %cst_20 : f32 to vector<8x256xf32>
    %29 = arith.addf %28, %27 : vector<8x256xf32>
    %30 = arith.divf %28, %29 : vector<8x256xf32>
    %31 = vector.extract_strided_slice %30 {offsets = [0, 0], sizes = [8, 128], strides = [1, 1]} : vector<8x256xf32> to vector<8x128xf32>
    %32 = vector.extract_strided_slice %30 {offsets = [0, 128], sizes = [8, 128], strides = [1, 1]} : vector<8x256xf32> to vector<8x128xf32>
    %33 = vector.extract_strided_slice %22 {offsets = [0, 256], sizes = [8, 128], strides = [1, 1]} : vector<8x384xf32> to vector<8x128xf32>
    %34 = vector.extract_strided_slice %19 {offsets = [0, 256], sizes = [8, 128], strides = [1, 1]} : vector<8x384xf32> to vector<8x128xf32>
    %35 = arith.addf %34, %14 : vector<8x128xf32>
    %36 = arith.mulf %31, %35 : vector<8x128xf32>
    %37 = arith.addf %33, %36 : vector<8x128xf32>
    %38 = math.tanh %37 : vector<8x128xf32>
    %39 = arith.subf %16, %38 : vector<8x128xf32>
    %40 = arith.mulf %32, %39 : vector<8x128xf32>
    %41 = arith.addf %38, %40 : vector<8x128xf32>
    %42 = arith.addi %15, %c0_i32_14 : i32
    %c10_i32 = arith.constant 10 : i32
    %43 = arith.cmpi slt, %42, %c10_i32 : i32
    %44 = arith.select %43, %41, %16 : vector<8x128xf32>
    %45 = arith.truncf %44 : vector<8x128xf32> to vector<8x128xbf16>
    %46 = arith.index_cast %c0_i32_14 : i32 to index
    %c0_21 = arith.constant 0 : index
    %c0_22 = arith.constant 0 : index
    %47 = vector.load %arg7[%46, %c0_21, %c0_22] : memref<4x8x128xbf16, #tpu.memory_space<vmem>>, vector<1x8x128xbf16>
    %48 = vector.shape_cast %47 : vector<1x8x128xbf16> to vector<8x128xbf16>
    %49 = vector.shape_cast %45 : vector<8x128xbf16> to vector<1x8x128xbf16>
    tpu.vector_store %arg7[%46, %c0_21, %c0_22], %49 {strides = array<i32>} : memref<4x8x128xbf16, #tpu.memory_space<vmem>>, vector<1x8x128xbf16>,
    %c1_i32 = arith.constant 1 : i32
    %50 = arith.truncf %44 : vector<8x128xf32> to vector<8x128xbf16>
    %c0_23 = arith.constant 0 : index
    %c0_24 = arith.constant 0 : index
    %51 = vector.load %arg4[%c0_23, %c0_24] : memref<128x384xbf16, #tpu.memory_space<vmem>>, vector<128x384xbf16>
    %cst_25 = arith.constant dense<0.000000e+00> : vector<8x384xf32>
    %52 = tpu.matmul %50, %51, %cst_25 {dimension_numbers = #tpu.dot_dimension_numbers<[1], [0], [0], [1], [0, 0, 1, 1], [], []>} : vector<8x128xbf16>, vector<128x384xbf16>, vector<8x384xf32> -> vector<8x384xf32>
    %53 = arith.index_cast %c1_i32 : i32 to index
    %c0_26 = arith.constant 0 : index
    %c0_27 = arith.constant 0 : index
    %54 = vector.load %arg9[%53, %c0_26, %c0_27] : memref<4x8x384xf32, #tpu.memory_space<vmem>>, vector<1x8x384xf32>
    %55 = vector.shape_cast %54 : vector<1x8x384xf32> to vector<8x384xf32>
    %56 = vector.extract_strided_slice %55 {offsets = [0, 0], sizes = [8, 256], strides = [1, 1]} : vector<8x384xf32> to vector<8x256xf32>
    %57 = vector.extract_strided_slice %52 {offsets = [0, 0], sizes = [8, 256], strides = [1, 1]} : vector<8x384xf32> to vector<8x256xf32>
    %58 = arith.addf %56, %57 : vector<8x256xf32>
    %59 = arith.negf %58 : vector<8x256xf32>
    %60 = math.exp %59 : vector<8x256xf32>
    %cst_28 = arith.constant 1.000000e+00 : f32
    %61 = vector.broadcast %cst_28 : f32 to vector<8x256xf32>
    %62 = arith.addf %61, %60 : vector<8x256xf32>
    %63 = arith.divf %61, %62 : vector<8x256xf32>
    %64 = vector.extract_strided_slice %63 {offsets = [0, 0], sizes = [8, 128], strides = [1, 1]} : vector<8x256xf32> to vector<8x128xf32>
    %65 = vector.extract_strided_slice %63 {offsets = [0, 128], sizes = [8, 128], strides = [1, 1]} : vector<8x256xf32> to vector<8x128xf32>
    %66 = vector.extract_strided_slice %55 {offsets = [0, 256], sizes = [8, 128], strides = [1, 1]} : vector<8x384xf32> to vector<8x128xf32>
    %67 = vector.extract_strided_slice %52 {offsets = [0, 256], sizes = [8, 128], strides = [1, 1]} : vector<8x384xf32> to vector<8x128xf32>
    %68 = arith.addf %67, %14 : vector<8x128xf32>
    %69 = arith.mulf %64, %68 : vector<8x128xf32>
    %70 = arith.addf %66, %69 : vector<8x128xf32>
    %71 = math.tanh %70 : vector<8x128xf32>
    %72 = arith.subf %44, %71 : vector<8x128xf32>
    %73 = arith.mulf %65, %72 : vector<8x128xf32>
    %74 = arith.addf %71, %73 : vector<8x128xf32>
    %75 = arith.addi %15, %c1_i32 : i32
    %c10_i32_29 = arith.constant 10 : i32
    %76 = arith.cmpi slt, %75, %c10_i32_29 : i32
    %77 = arith.select %76, %74, %44 : vector<8x128xf32>
    %78 = arith.truncf %77 : vector<8x128xf32> to vector<8x128xbf16>
    %79 = arith.index_cast %c1_i32 : i32 to index
    %c0_30 = arith.constant 0 : index
    %c0_31 = arith.constant 0 : index
    %80 = vector.load %arg7[%79, %c0_30, %c0_31] : memref<4x8x128xbf16, #tpu.memory_space<vmem>>, vector<1x8x128xbf16>
    %81 = vector.shape_cast %80 : vector<1x8x128xbf16> to vector<8x128xbf16>
    %82 = vector.shape_cast %78 : vector<8x128xbf16> to vector<1x8x128xbf16>
    tpu.vector_store %arg7[%79, %c0_30, %c0_31], %82 {strides = array<i32>} : memref<4x8x128xbf16, #tpu.memory_space<vmem>>, vector<1x8x128xbf16>,
    %c2_i32 = arith.constant 2 : i32
    %83 = arith.truncf %77 : vector<8x128xf32> to vector<8x128xbf16>
    %c0_32 = arith.constant 0 : index
    %c0_33 = arith.constant 0 : index
    %84 = vector.load %arg4[%c0_32, %c0_33] : memref<128x384xbf16, #tpu.memory_space<vmem>>, vector<128x384xbf16>
    %cst_34 = arith.constant dense<0.000000e+00> : vector<8x384xf32>
    %85 = tpu.matmul %83, %84, %cst_34 {dimension_numbers = #tpu.dot_dimension_numbers<[1], [0], [0], [1], [0, 0, 1, 1], [], []>} : vector<8x128xbf16>, vector<128x384xbf16>, vector<8x384xf32> -> vector<8x384xf32>
    %86 = arith.index_cast %c2_i32 : i32 to index
    %c0_35 = arith.constant 0 : index
    %c0_36 = arith.constant 0 : index
    %87 = vector.load %arg9[%86, %c0_35, %c0_36] : memref<4x8x384xf32, #tpu.memory_space<vmem>>, vector<1x8x384xf32>
    %88 = vector.shape_cast %87 : vector<1x8x384xf32> to vector<8x384xf32>
    %89 = vector.extract_strided_slice %88 {offsets = [0, 0], sizes = [8, 256], strides = [1, 1]} : vector<8x384xf32> to vector<8x256xf32>
    %90 = vector.extract_strided_slice %85 {offsets = [0, 0], sizes = [8, 256], strides = [1, 1]} : vector<8x384xf32> to vector<8x256xf32>
    %91 = arith.addf %89, %90 : vector<8x256xf32>
    %92 = arith.negf %91 : vector<8x256xf32>
    %93 = math.exp %92 : vector<8x256xf32>
    %cst_37 = arith.constant 1.000000e+00 : f32
    %94 = vector.broadcast %cst_37 : f32 to vector<8x256xf32>
    %95 = arith.addf %94, %93 : vector<8x256xf32>
    %96 = arith.divf %94, %95 : vector<8x256xf32>
    %97 = vector.extract_strided_slice %96 {offsets = [0, 0], sizes = [8, 128], strides = [1, 1]} : vector<8x256xf32> to vector<8x128xf32>
    %98 = vector.extract_strided_slice %96 {offsets = [0, 128], sizes = [8, 128], strides = [1, 1]} : vector<8x256xf32> to vector<8x128xf32>
    %99 = vector.extract_strided_slice %88 {offsets = [0, 256], sizes = [8, 128], strides = [1, 1]} : vector<8x384xf32> to vector<8x128xf32>
    %100 = vector.extract_strided_slice %85 {offsets = [0, 256], sizes = [8, 128], strides = [1, 1]} : vector<8x384xf32> to vector<8x128xf32>
    %101 = arith.addf %100, %14 : vector<8x128xf32>
    %102 = arith.mulf %97, %101 : vector<8x128xf32>
    %103 = arith.addf %99, %102 : vector<8x128xf32>
    %104 = math.tanh %103 : vector<8x128xf32>
    %105 = arith.subf %77, %104 : vector<8x128xf32>
    %106 = arith.mulf %98, %105 : vector<8x128xf32>
    %107 = arith.addf %104, %106 : vector<8x128xf32>
    %108 = arith.addi %15, %c2_i32 : i32
    %c10_i32_38 = arith.constant 10 : i32
    %109 = arith.cmpi slt, %108, %c10_i32_38 : i32
    %110 = arith.select %109, %107, %77 : vector<8x128xf32>
    %111 = arith.truncf %110 : vector<8x128xf32> to vector<8x128xbf16>
    %112 = arith.index_cast %c2_i32 : i32 to index
    %c0_39 = arith.constant 0 : index
    %c0_40 = arith.constant 0 : index
    %113 = vector.load %arg7[%112, %c0_39, %c0_40] : memref<4x8x128xbf16, #tpu.memory_space<vmem>>, vector<1x8x128xbf16>
    %114 = vector.shape_cast %113 : vector<1x8x128xbf16> to vector<8x128xbf16>
    %115 = vector.shape_cast %111 : vector<8x128xbf16> to vector<1x8x128xbf16>
    tpu.vector_store %arg7[%112, %c0_39, %c0_40], %115 {strides = array<i32>} : memref<4x8x128xbf16, #tpu.memory_space<vmem>>, vector<1x8x128xbf16>,
    %c3_i32 = arith.constant 3 : i32
    %116 = arith.truncf %110 : vector<8x128xf32> to vector<8x128xbf16>
    %c0_41 = arith.constant 0 : index
    %c0_42 = arith.constant 0 : index
    %117 = vector.load %arg4[%c0_41, %c0_42] : memref<128x384xbf16, #tpu.memory_space<vmem>>, vector<128x384xbf16>
    %cst_43 = arith.constant dense<0.000000e+00> : vector<8x384xf32>
    %118 = tpu.matmul %116, %117, %cst_43 {dimension_numbers = #tpu.dot_dimension_numbers<[1], [0], [0], [1], [0, 0, 1, 1], [], []>} : vector<8x128xbf16>, vector<128x384xbf16>, vector<8x384xf32> -> vector<8x384xf32>
    %119 = arith.index_cast %c3_i32 : i32 to index
    %c0_44 = arith.constant 0 : index
    %c0_45 = arith.constant 0 : index
    %120 = vector.load %arg9[%119, %c0_44, %c0_45] : memref<4x8x384xf32, #tpu.memory_space<vmem>>, vector<1x8x384xf32>
    %121 = vector.shape_cast %120 : vector<1x8x384xf32> to vector<8x384xf32>
    %122 = vector.extract_strided_slice %121 {offsets = [0, 0], sizes = [8, 256], strides = [1, 1]} : vector<8x384xf32> to vector<8x256xf32>
    %123 = vector.extract_strided_slice %118 {offsets = [0, 0], sizes = [8, 256], strides = [1, 1]} : vector<8x384xf32> to vector<8x256xf32>
    %124 = arith.addf %122, %123 : vector<8x256xf32>
    %125 = arith.negf %124 : vector<8x256xf32>
    %126 = math.exp %125 : vector<8x256xf32>
    %cst_46 = arith.constant 1.000000e+00 : f32
    %127 = vector.broadcast %cst_46 : f32 to vector<8x256xf32>
    %128 = arith.addf %127, %126 : vector<8x256xf32>
    %129 = arith.divf %127, %128 : vector<8x256xf32>
    %130 = vector.extract_strided_slice %129 {offsets = [0, 0], sizes = [8, 128], strides = [1, 1]} : vector<8x256xf32> to vector<8x128xf32>
    %131 = vector.extract_strided_slice %129 {offsets = [0, 128], sizes = [8, 128], strides = [1, 1]} : vector<8x256xf32> to vector<8x128xf32>
    %132 = vector.extract_strided_slice %121 {offsets = [0, 256], sizes = [8, 128], strides = [1, 1]} : vector<8x384xf32> to vector<8x128xf32>
    %133 = vector.extract_strided_slice %118 {offsets = [0, 256], sizes = [8, 128], strides = [1, 1]} : vector<8x384xf32> to vector<8x128xf32>
    %134 = arith.addf %133, %14 : vector<8x128xf32>
    %135 = arith.mulf %130, %134 : vector<8x128xf32>
    %136 = arith.addf %132, %135 : vector<8x128xf32>
    %137 = math.tanh %136 : vector<8x128xf32>
    %138 = arith.subf %110, %137 : vector<8x128xf32>
    %139 = arith.mulf %131, %138 : vector<8x128xf32>
    %140 = arith.addf %137, %139 : vector<8x128xf32>
    %141 = arith.addi %15, %c3_i32 : i32
    %c10_i32_47 = arith.constant 10 : i32
    %142 = arith.cmpi slt, %141, %c10_i32_47 : i32
    %143 = arith.select %142, %140, %110 : vector<8x128xf32>
    %144 = arith.truncf %143 : vector<8x128xf32> to vector<8x128xbf16>
    %145 = arith.index_cast %c3_i32 : i32 to index
    %c0_48 = arith.constant 0 : index
    %c0_49 = arith.constant 0 : index
    %146 = vector.load %arg7[%145, %c0_48, %c0_49] : memref<4x8x128xbf16, #tpu.memory_space<vmem>>, vector<1x8x128xbf16>
    %147 = vector.shape_cast %146 : vector<1x8x128xbf16> to vector<8x128xbf16>
    %148 = vector.shape_cast %144 : vector<8x128xbf16> to vector<1x8x128xbf16>
    tpu.vector_store %arg7[%145, %c0_48, %c0_49], %148 {strides = array<i32>} : memref<4x8x128xbf16, #tpu.memory_space<vmem>>, vector<1x8x128xbf16>,
    %c4_i32_50 = arith.constant 4 : i32
    %c0_51 = arith.constant 0 : index
    %c0_52 = arith.constant 0 : index
    %149 = vector.load %arg8[%c0_51, %c0_52] : memref<8x128xf32, #tpu.memory_space<vmem>>, vector<8x128xf32>
    tpu.vector_store %arg8[%c0_51, %c0_52], %143 {strides = array<i32>} : memref<8x128xf32, #tpu.memory_space<vmem>>, vector<8x128xf32>,
    return
  }
  func.func @transform_0(%arg0: i32, %arg1: i32) -> (i32, i32, i32) {
    %c0_i32 = arith.constant 0 : i32
    %c0_i32_0 = arith.constant 0 : i32
    return %arg1, %arg0, %c0_i32 : i32, i32, i32
  }
  func.func @transform_1(%arg0: i32, %arg1: i32) -> (i32, i32) {
    %c0_i32 = arith.constant 0 : i32
    %c0_i32_0 = arith.constant 0 : i32
    %c0_i32_1 = arith.constant 0 : i32
    return %c0_i32, %c0_i32_0 : i32, i32
  }
  func.func @transform_2(%arg0: i32, %arg1: i32) -> (i32, i32) {
    %c0_i32 = arith.constant 0 : i32
    %c0_i32_0 = arith.constant 0 : i32
    %c0_i32_1 = arith.constant 0 : i32
    return %c0_i32, %c0_i32_0 : i32, i32
  }
  func.func @transform_3(%arg0: i32, %arg1: i32) -> (i32, i32) {
    %c0_i32 = arith.constant 0 : i32
    %c0_i32_0 = arith.constant 0 : i32
    %c0_i32_1 = arith.constant 0 : i32
    return %c0_i32, %c0_i32_0 : i32, i32
  }
  func.func @transform_4(%arg0: i32, %arg1: i32) -> (i32, i32) {
    %c0_i32 = arith.constant 0 : i32
    %c0_i32_0 = arith.constant 0 : i32
    %c0_i32_1 = arith.constant 0 : i32
    return %c0_i32, %c0_i32_0 : i32, i32
  }
  func.func @transform_5(%arg0: i32, %arg1: i32) -> (i32, i32, i32) {
    %c0_i32 = arith.constant 0 : i32
    %c0_i32_0 = arith.constant 0 : i32
    return %arg1, %arg0, %c0_i32 : i32, i32, i32
  }
}

</mosaic_0001>

<bundles_post_ra>
// kernel: tpu_custom_call.1
= control target key start
LH: loop header
LB: loop body
LE: loop exit
PB: predicated region body
PF: predicated region fallthrough
CT: control target
= control target key end

     0   :  { %6 = vsyncpa [#allocation3], 0  ;;  %s482_s0 = inlined_call_operand.hbm [shape: f32[16,128], index: 0, kind: input, shape index: {}]   ;;  %s483_s1 = inlined_call_operand.hbm [shape: f32[16,128], index: 1, kind: output, shape index: {}]  }
   0x1   :  { %7 = vsyncpa [#allocation4], 0 }
   0x2   :  { %9 = vsyncpa [#allocation4 + $0x1], 0  ;;  %s354_s6 = smov 0   ;;  %s356_s7 = smov 0  }
   0x3   :  { %s358_s8 = smov 0   ;;  %s360_s9 = smov 0  }
   0x4 LB: > { %s375_s10 = sadd.s32 4294967295, %s340_s9   ;;  %s193_s11 = sadd.s32 4294967294, %s340_s9   ;;  %s340_s9 = sphi %s360_s9, %s500_s9   ;;  %s336_s8 = sphi %s358_s8, %s499_s8   ;;  %s332_s7 = sphi %s356_s7, %s498_s7   ;;  %s328_s6 = sphi %s354_s6, %s497_s6  }
   0x5   : > { %s379_s12 = sadd.s32 1, %s340_s9   ;;  %s22_s13 = sadd.s32 1, %s336_s8 }
   0x6   : > { %s19_s14 = ssub.s32 %s340_s9, %s379_s12  ;;  %p35_p0 = scmp.ne.s32.totalorder %s332_s7, %s328_s6 }
   0x7   : > { %p20_p1 = scmp.eq.s32.totalorder %s19_s14, 0  ;;  %p36_p2 = scmp.eq.s32.totalorder %s375_s10, 0 }
   0x8   : > { %p58_p3 = scmp.ne.s32.totalorder %s336_s8, %s332_s7  ;;  %p59_p4 = scmp.eq.s32.totalorder %s375_s10, 1 }
   0x9   : > { %s391_s15 = scalar_select %p20_p1, %s336_s8, %s22_s13  }
   0xa   : > { %p393_p5 = por %p59_p4, %p58_p3  ;;  %p65_p6 = scmp.eq.s32.totalorder %s193_s11, 1 }
   0xb   : > { %p194_p7 = scmp.ge.s32.totalorder %s340_s9, 1  ;;  %p398_p8 = por %p36_p2, %p35_p0 }
   0xc   : > { %s488_s16 = scalar_select %p393_p5, 1, 0 }
   0xd   : > { %s489_s17 = scalar_select %p398_p8, 1, 0 }
   0xe   : > { %p72_p9 = scmp.lt.s32.totalorder %s340_s9, 3  ;;  %p403_p10 = por %p65_p6, %p35_p0 }
   0xf   : > { %s195_s19 = sshll.u32 %s375_s10, 7  ;;  %s342_s21 = smov [#allocation2]  }
  0x10   : > { %s490_s18 = scalar_select %p403_p10, 1, 0 }
  0x11   : > { %p408_p11 = pnand %p194_p7, %p72_p9  ;;  %s87_s22 = sshll.u32 %s342_s21, 4  ;;  %s88_s22 = int_to_ptr.vmem [resolvable:$true] %s87_s22 }
  0x12   : > { %s85_s25 = scalar_lea.hbm %s482_s0, %s195_s19  ;;  %s253_s30 = scalar_lea.hbm %s482_s0, 256 }
  0x13   : > { %s491_s20 = scalar_select %p408_p11, 1, 0 }
  0x14   : > { %p206_p12 = pneg %p408_p11  ;;  %s248_s27 = scalar_lea.hbm %s85_s25, 128 }
  0x15   : > { %p249_p0 = scmp.ne.s32.totalorder %s85_s25, %s248_s27  ;;  %p254_p4 = scmp.lt.s32.totalorder %s85_s25, %s482_s0 }
  0x16   : > { %p421_p13 = pnand %p206_p12, %p398_p8  ;;  %p255_p6 = scmp.lt.s32.totalorder %s253_s30, %s248_s27 }
  0x18   : > { %p250_p1 = pneg %p421_p13  ;;  %p256_p7 = por %p255_p6, %p254_p4 }
  0x1a   : > { %p251_p2 = pnand %p250_p1, %p249_p0 }
  0x1c   : > { %p252_p3 = pneg %p251_p2 }
  0x1e   : > { %p257_p9 = pnand %p256_p7, %p252_p3 }
  0x20   : > { %260 = shalt.err (!%p257_p9)
}
  0x21   : > { %s261_s4 = scalar_lea.vmem %s88_s22, 128  ;;  %p269_p8 = scmp.lt.s32.totalorder %s88_s22, %s88_s22 }
  0x22   : > { %p262_p12 = scmp.ne.s32.totalorder %s88_s22, %s261_s4  ;;  %p270_p11 = scmp.lt.s32.totalorder %s261_s4, %s261_s4 }
  0x24   : > { %p264_p10 = pnand %p262_p12, %p250_p1  ;;  %p271_p0 = por %p270_p11, %p269_p8 }
  0x26   : > { %p265_p5 = pneg %p264_p10 }
  0x28   : > { %p272_p2 = pnand %p271_p0, %p265_p5 }
  0x2a   : > { %275 = shalt.err (!%p272_p2)
}
  0x2b   : > { %209 = dma.hbm_to_vmem [thread:$0]  (!%p421_p13), %s85_s25, 128, %s88_s22, [#allocation3]  }
  0x2c   : > { %p493_p4 = scmp.ne.s32.totalorder %s491_s20, 0 }
  0x2d   : > { %p494_p6 = scmp.ne.s32.totalorder (!%p493_p4), %s489_s17, 0 }
  0x2e   : > { %100 = sbr.rel (%p493_p4) target bundleno = 77 (0x4d), region = 24 }
  0x33   : > { %319 = dma.done.wait (%p494_p6), [#allocation3], 128  }
  0x34   : > { %321 = vsyncadd (%p494_p6), [#allocation3], 4294967168  ;;  %s112_s5 = sand.u32 1, %s332_s7   ;;  %v115_v0 = vld [vmem:[#allocation2] sm:$0xff]  ;;  %s447_s20 = scalar_lea.hbm %s483_s1, %s195_s19 }
  0x35   : > { %s197_s11 = sshll.u32 %s112_s5, 3  ;;  %v116_v1 = vadd.f32 1.0, %v115_v0  ;;  %s119_s23 = scalar_lea.sflag [#allocation4], %s112_s5 }
  0x36   : > { %s114_s13 = scalar_lea.vmem [#allocation5], %s197_s11  ;;  %p495_p8 = scmp.ne.s32.totalorder %s488_s16, 0 }
  0x37   : > { %s132_s14 = sshll.u32 %s114_s13, 4  ;;  %117 = vst [vmem:[%s114_s13] sm:$0xff] %v116_v1  ;;  %s343_s24 = smov [#allocation5]   ;;  %s133_s14 = int_to_ptr.vmem [resolvable:$true] %s132_s14 }
  0x38   : > { %s276_s17 = scalar_lea.vmem %s133_s14, 128  ;;  %s280_s25 = sshll.u32 %s343_s24, 4  ;;  %s281_s25 = int_to_ptr.vmem [resolvable:$false] %s280_s25 }
  0x39   : > { %p277_p5 = scmp.ne.s32.totalorder %s133_s14, %s276_s17  ;;  %s282_s26 = scalar_lea.vmem %s281_s25, 256 }
  0x3a   : > { %p283_p13 = scmp.lt.s32.totalorder %s133_s14, %s281_s25  ;;  %p284_p1 = scmp.lt.s32.totalorder %s282_s26, %s276_s17 }
  0x3b   : > { %p278_p10 = pnand %p277_p5, %p495_p8 }
  0x3c   : > { %p285_p3 = por %p284_p1, %p283_p13 }
  0x3d   : > { %p279_p11 = pneg %p278_p10 }
  0x3f   : > { %p286_p7 = pnand %p285_p3, %p279_p11 }
  0x41   : > { %289 = shalt.err (!%p286_p7)
}
  0x42   : > { %s290_s10 = scalar_lea.hbm %s447_s20, 128  ;;  %s294_s28 = scalar_lea.hbm %s483_s1, 256 }
  0x43   : > { %p291_p9 = scmp.ne.s32.totalorder %s447_s20, %s290_s10  ;;  %p295_p2 = scmp.lt.s32.totalorder %s447_s20, %s483_s1 }
  0x44   : > { %p296_p4 = scmp.lt.s32.totalorder %s294_s28, %s290_s10 }
  0x45   : > { %p292_p12 = pnand %p291_p9, %p495_p8 }
  0x46   : > { %p297_p6 = por %p296_p4, %p295_p2 }
  0x47   : > { %p293_p0 = pneg %p292_p12 }
  0x49   : > { %p298_p5 = pnand %p297_p6, %p293_p0 }
  0x4b   : > { %301 = shalt.err (!%p298_p5)
}
  0x4c   : > { %204 = dma.vmem_to_hbm [thread:$0]  (%p495_p8), %s133_s14, 128, %s447_s20, %s119_s23  }
  0x4d PF: > { %p214_p10 = scmp.ge.s32.totalorder %s340_s9, 2  ;;  %s144_s2 = sand.u32 1, %s328_s6  }
  0x4e   : > { %p496_p11 = scmp.ne.s32.totalorder %s490_s18, 0  ;;  %s145_s3 = scalar_lea.sflag [#allocation4], %s144_s2 }
  0x50   : > { %p211_p13 = pnand %p214_p10, %p496_p11 }
  0x52   : > { %p212_p1 = pneg %p211_p13 }
  0x54   : > { %323 = dma.done.wait (%p212_p1), %s145_s3, 128  }
  0x55   : > { %325 = vsyncadd (%p212_p1), %s145_s3, 4294967168  ;;  %p12_p3 = scmp.ge.s32.totalorder %s379_s12, 4   ;;  %s497_s6 = smov %s332_s7 }
  0x56   : > { %s498_s7 = smov %s336_s8  ;;  %s499_s8 = smov %s391_s15 }
  0x57   : > { %s500_s9 = smov %s379_s12  ;;  %14 = sbr.rel (!%p12_p3) target bundleno = 4 (0x4), region = 62 }
  0x5c   :  { %150 = vsyncpa [#allocation3], 1 }
  0x5d   :  { %152 = vsyncpa [#allocation3 + $0x1], 1 }
  0x5e   :  { %153 = vsyncpa [#allocation4], 1 }
  0x5f   :  { %155 = vsyncpa [#allocation4 + $0x1], 1 }

// kernel: gru_model_forward.3
= control target key start
LH: loop header
LB: loop body
LE: loop exit
PB: predicated region body
PF: predicated region fallthrough
CT: control target
= control target key end

     0   :  { %s1883_s24 = smov 0   ;;  %s1885_s25 = smov 0   ;;  %s2351_s0 = inlined_call_operand.vmem [shape: bf16[12,8,128], index: 0, kind: input, shape index: {}]   ;;  %s2352_s1 = inlined_call_operand.vmem [shape: bf16[128,384], index: 1, kind: input, shape index: {}]   ;;  %s2353_s2 = inlined_call_operand.vmem [shape: bf16[128,384], index: 2, kind: input, shape index: {}]   ;;  %s2354_s3 = inlined_call_operand.vmem [shape: f32[1,384], index: 3, kind: input, shape index: {}]   ;;  %s2355_s4 = inlined_call_operand.vmem [shape: f32[1,128], index: 4, kind: input, shape index: {}]   ;;  %s2356_s5 = inlined_call_operand.vmem [shape: bf16[128,128], index: 5, kind: input, shape index: {}]   ;;  %s2357_s6 = inlined_call_operand.vmem [shape: f32[1,128], index: 6, kind: input, shape index: {}]   ;;  %s2358_s7 = inlined_call_operand.vmem [shape: f32[8,128], index: 7, kind: output, shape index: {}]  }
   0x1   :  { %s1887_s26 = smov 0  }
   0x2 LB: > { %s26_s27 = sadd.s32 1, %s1831_s25  ;;  %p1417_p0 = scmp.ge.s32.totalorder %s1835_s26, 1  ;;  %s1835_s26 = sphi %s1887_s26, %s17_s26   ;;  %s1831_s25 = sphi %s1885_s25, %s2360_s25   ;;  %s1827_s24 = sphi %s1883_s24, %s2359_s24  }
   0x3   : > { %p27_p1 = scmp.ge.s32.totalorder %s26_s27, 3  ;;  %p255_p2 = scmp.lt.s32.totalorder %s1835_s26, 4 }
   0x5   : > { %s2362_s27 = smov (%p27_p1, %s26_s27), 0  ;;  %p256_p3 = pnand %p1417_p0, %p255_p2 }
   0x6   : > { %s1904_s28 = sshll.u32 (!%p256_p3), %s1827_s24, 2  ;;  %p1420_p5 = scmp.ne.s32.totalorder (!%p256_p3), %s1827_s24, 0 }
   0x7   : > { %259 = sbr.rel (%p256_p3) target bundleno = 1332 (0x534), region = 48  ;;  %p290_p4 = scmp.lt.s32.totalorder (!%p256_p3), %s1904_s28, 11 }
   0xc   : > { %s291_s29 = scalar_select %p290_p4, %s1904_s28, 11 }
   0xd   : > { %306 = sbr.rel (%p1420_p5) target bundleno = 20 (0x14), region = 52 }
   0xe   : > { %s1419_s30 = sshll.u32 %s291_s29, 2 }
   0xf   : > { %s1911_s10 = scalar_lea.vmem %s2351_s0, %s1419_s30 }
  0x12   : > { %v1837_v0 = vmov 0.0  }
  0x13   : > { %307 = vst [vmem:[#allocation2] sm:$0xff] %v1837_v0 }
  0x14 PF: > { %v1699_v1 = vld [vmem:[%s2352_s1 + $0xac] ss:$12 sps:$4 sm:$0xff]   ;;  %v1701_v2 = vld [vmem:[%s2352_s1 + $0xa8] ss:$12 sps:$4 sm:$0xff]   ;;  %v1838_v3 = vmov 0   ;;  %v1725_v13 = vld [vmem:[%s1911_s10] sm:$0xff]   ;;  %v346_v55 = vlaneseq }
  0x15   : > { %533 = vmatprep.mubr.bf16.mxu0 %v1838_v3  ;;  %501 = vmatprep.subr.bf16.mxu0 %v1699_v1  ;;  %v1702_v4 = vld [vmem:[%s2352_s1 + $0x94] ss:$12 sps:$4 sm:$0xff]   ;;  %v1704_v5 = vld [vmem:[%s2352_s1 + $0x90] ss:$12 sps:$4 sm:$0xff]   ;;  %v1707_v7 = vld [vmem:[%s2352_s1 + $0x78] ss:$12 sps:$4 sm:$0xff]  }
  0x16   : > { %502 = vmatpush1.bf16.msra.mxu0 %v1701_v2  ;;  %v1705_v6 = vld [vmem:[%s2352_s1 + $0x7c] ss:$12 sps:$4 sm:$0xff]   ;;  %v1708_v8 = vld [vmem:[%s2352_s1 + $0x64] ss:$12 sps:$4 sm:$0xff]   ;;  %v1710_v10 = vld [vmem:[%s2352_s1 + $0x60] ss:$12 sps:$4 sm:$0xff]   ;;  %1565 = vmatprep.mubr.bf16.mxu1 %v1725_v13 }
  0x17   : > { %503 = vmatprep.subr.bf16.mxu0 %v1702_v4  ;;  %v1720_v9 = vld [vmem:[%s2352_s1 + $0xb0] ss:$12 sps:$4 sm:$0xff]   ;;  %v1711_v11 = vld [vmem:[%s2352_s1 + $0x4c] ss:$12 sps:$4 sm:$0xff]   ;;  %v1713_v14 = vld [vmem:[%s2352_s1 + $0x48] ss:$12 sps:$4 sm:$0xff]  }
  0x18   : > { %1549 = vmatprep.subr.bf16.mxu1 %v1720_v9  ;;  %v1724_v12 = vld [vmem:[%s2352_s1 + $0x98] ss:$12 sps:$4 sm:$0xff]   ;;  %v1729_v15 = vld [vmem:[%s2352_s1 + $0x80] ss:$12 sps:$4 sm:$0xff]   ;;  %v1733_v17 = vld [vmem:[%s2352_s1 + $0x68] ss:$12 sps:$4 sm:$0xff]  }
  0x19   : > { %1550 = vmatpush3.bf16.msra.mxu1 %v1720_v9  ;;  %v1714_v16 = vld [vmem:[%s2352_s1 + $0x34] ss:$12 sps:$4 sm:$0xff]   ;;  %v1716_v18 = vld [vmem:[%s2352_s1 + $0x30] ss:$12 sps:$4 sm:$0xff]   ;;  %v1719_v21 = vld [vmem:[%s2352_s1 + $0x18] ss:$12 sps:$4 sm:$0xff]  }
  0x1a   : > { %504 = vmatpush1.bf16.msra.mxu0 %v1704_v5  ;;  %1551 = vmatprep.subr.bf16.mxu1 %v1724_v12  ;;  %v1717_v19 = vld [vmem:[%s2352_s1 + $0x1c] ss:$12 sps:$4 sm:$0xff]   ;;  %v1721_v22 = vld [vmem:[%s2352_s1 + $0x4] ss:$12 sps:$4 sm:$0xff]   ;;  %v1723_v24 = vld [vmem:[%s2352_s1] ss:$12 sps:$4 sm:$0xff]  }
  0x1b   : > { %505 = vmatprep.subr.bf16.mxu0 %v1705_v6  ;;  %v1737_v20 = vld [vmem:[%s2352_s1 + $0x50] ss:$12 sps:$4 sm:$0xff]   ;;  %v1741_v23 = vld [vmem:[%s2352_s1 + $0x38] ss:$12 sps:$4 sm:$0xff]   ;;  %v1746_v26 = vld [vmem:[%s2352_s1 + $0x20] ss:$12 sps:$4 sm:$0xff]  }
  0x1c   : > { %v1985_v25 = vld [vmem:[%s2353_s2 + $0xac] ss:$12 sps:$4 sm:$0xff]   ;;  %v1993_v27 = vld [vmem:[%s2353_s2 + $0xa8] ss:$12 sps:$4 sm:$0xff]   ;;  %v2008_v30 = vld [vmem:[%s2353_s2 + $0x90] ss:$12 sps:$4 sm:$0xff]  }
  0x1d   : > { %1552 = vmatpush3.bf16.msra.mxu1 %v1724_v12  ;;  %v1999_v28 = vld [vmem:[%s2353_s2 + $0x94] ss:$12 sps:$4 sm:$0xff]   ;;  %v2015_v31 = vld [vmem:[%s2353_s2 + $0x7c] ss:$12 sps:$4 sm:$0xff]   ;;  %v2022_v33 = vld [vmem:[%s2353_s2 + $0x78] ss:$12 sps:$4 sm:$0xff]  }
  0x1e   : > { %506 = vmatpush1.bf16.msra.mxu0 %v1707_v7  ;;  %1553 = vmatprep.subr.bf16.mxu1 %v1729_v15  ;;  %v1750_v29 = vld [vmem:[%s2352_s1 + $0x8] ss:$12 sps:$4 sm:$0xff]   ;;  %v2028_v34 = vld [vmem:[%s2353_s2 + $0x64] ss:$12 sps:$4 sm:$0xff]   ;;  %v1839_v36 = vmov 0.0   ;;  %vm1840_vm0 = vmmov 0  }
  0x1f   : > { %507 = vmatprep.subr.bf16.mxu0 %v1708_v8  ;;  %v1745_v32 = vld [vmem:[%s1911_s10 + $0x8] sm:$0xff]   ;;  %v2033_v35 = vld [vmem:[%s2353_s2 + $0xb0] ss:$12 sps:$4 sm:$0xff]   ;;  %v2053_v39 = vld [vmem:[%s2353_s2 + $0x98] ss:$12 sps:$4 sm:$0xff]   ;;  %v347_v56 = vshrl.u32 %v346_v55, 7 }
  0x20   : > { %v2040_v37 = vld [vmem:[%s2353_s2 + $0x60] ss:$12 sps:$4 sm:$0xff]   ;;  %v2062_v40 = vld [vmem:[%s2353_s2 + $0x48] ss:$12 sps:$4 sm:$0xff]   ;;  %v2081_v43 = vld [vmem:[%s2353_s2 + $0x30] ss:$12 sps:$4 sm:$0xff]  }
  0x21   : > { %1554 = vmatpush3.bf16.msra.mxu1 %v1729_v15  ;;  %v2047_v38 = vld [vmem:[%s2353_s2 + $0x4c] ss:$12 sps:$4 sm:$0xff]   ;;  %v2068_v41 = vld [vmem:[%s2353_s2 + $0x34] ss:$12 sps:$4 sm:$0xff]   ;;  %v2087_v44 = vld [vmem:[%s2353_s2 + $0x1c] ss:$12 sps:$4 sm:$0xff]  }
  0x22   : > { %508 = vmatpush1.bf16.msra.mxu0 %v1710_v10  ;;  %1555 = vmatprep.subr.bf16.mxu1 %v1733_v17  ;;  %v2074_v42 = vld [vmem:[%s2353_s2 + $0x80] ss:$12 sps:$4 sm:$0xff]   ;;  %v2093_v45 = vld [vmem:[%s2353_s2 + $0x68] ss:$12 sps:$4 sm:$0xff]   ;;  %v2100_v46 = vld [vmem:[%s2353_s2 + $0x18] ss:$12 sps:$4 sm:$0xff]  }
  0x23   : > { %509 = vmatprep.subr.bf16.mxu0 %v1711_v11  ;;  %v2106_v47 = vld [vmem:[%s2353_s2 + $0x4] ss:$12 sps:$4 sm:$0xff]   ;;  %v2119_v49 = vld [vmem:[%s2353_s2] ss:$12 sps:$4 sm:$0xff]   ;;  %v2149_v54 = vld [vmem:[%s2353_s2 + $0x8] ss:$12 sps:$4 sm:$0xff]  }
  0x24   : > { %v2112_v48 = vld [vmem:[%s2353_s2 + $0x50] ss:$12 sps:$4 sm:$0xff]   ;;  %v2121_v50 = vld [vmem:[#allocation2] sm:$0xff]  ;;  %v348_v57 = vsub.s32 0, %v347_v56  ;;  %v352_v60 = vsub.s32 1, %v347_v56  ;;  %v356_v63 = vsub.s32 2, %v347_v56 }
  0x25   : > { %1556 = vmatpush3.bf16.msra.mxu1 %v1733_v17  ;;  %v2128_v51 = vld [vmem:[%s2353_s2 + $0x38] ss:$12 sps:$4 sm:$0xff]   ;;  %v624_v52 = vpack.c.bf16 %v2121_v50, %v2121_v50  ;;  %v2139_v53 = vld [vmem:[%s2353_s2 + $0x20] ss:$12 sps:$4 sm:$0xff]   ;;  %p890_p6 = scmp.lt.s32.totalorder %s1904_s28, 10  ;;  %s1002_s29 = sadd.s32 1, %s1904_s28 }
  0x26   : > { %510 = vmatpush1.bf16.msra.mxu0 %v1713_v14  ;;  %1557 = vmatprep.subr.bf16.mxu1 %v1737_v20  ;;  %v344_v58 = vld [vmem:[%s2354_s3] sm:$0x7]  ;;  %p1003_p7 = scmp.lt.s32.totalorder %s1002_s29, 10  ;;  %s1115_s8 = sadd.s32 2, %s1904_s28 }
  0x27   : > { %511 = vmatprep.subr.bf16.mxu0 %v1714_v16  ;;  %v349_v62 = vrot.slane %v344_v58, %v348_v57  ;;  %v353_v1 = vrot.slane %v344_v58, %v352_v60  ;;  %v357_v6 = vrot.slane %v344_v58, %v356_v63  ;;  %s891_s10 = scalar_select %p890_p6, 1, 0 }
  0x28   : > { %s1004_s30 = scalar_select %p1003_p7, 1, 0 }
  0x29   : > { %1558 = vmatpush3.bf16.msra.mxu1 %v1737_v20  ;;  %p1116_p8 = scmp.lt.s32.totalorder %s1115_s8, 10  ;;  %s1228_s11 = sadd.s32 3, %s1904_s28 }
  0x2a   : > { %512 = vmatpush1.bf16.msra.mxu0 %v1716_v18  ;;  %1559 = vmatprep.subr.bf16.mxu1 %v1741_v23  ;;  %p1229_p9 = scmp.lt.s32.totalorder %s1228_s11, 10  ;;  %p1481_p10 = scmp.ne.s32.totalorder %s1827_s24, 2 }
  0x2b   : > { %513 = vmatprep.subr.bf16.mxu0 %v1717_v19  ;;  %s1117_s9 = scalar_select %p1116_p8, 1, 0 }
  0x2c   : > { %s1230_s12 = scalar_select %p1229_p9, 1, 0 }
  0x2d   : > { %1560 = vmatpush3.bf16.msra.mxu1 %v1741_v23 }
  0x2e   : > { %514 = vmatpush1.bf16.msra.mxu0 %v1719_v21  ;;  %1561 = vmatprep.subr.bf16.mxu1 %v1746_v26 }
  0x2f   : > { %515 = vmatprep.subr.bf16.mxu0 %v1721_v22 }
  0x31   : > { %1562 = vmatpush3.bf16.msra.mxu1 %v1746_v26 }
  0x32   : > { %516 = vmatpush1.bf16.msra.mxu0 %v1723_v24  ;;  %1563 = vmatprep.subr.bf16.mxu1 %v1750_v29 }
  0x33   : > { %785 = vmatprep.subr.bf16.mxu0 %v1985_v25 }
  0x35   : > { %534 = vmatmul.mubr.bf16.vlgmr.msra.gmra.mxu0 %v1725_v13  ;;  %1564 = vmatpush3.bf16.msra.mxu1 %v1750_v29 }
  0x36   : > { %786 = vmatpush1.bf16.msra.mxu0 %v1993_v27  ;;  %543 = vmatprep.mubr.bf16.mxu0 %v1838_v3 }
  0x37   : > { %787 = vmatprep.subr.bf16.mxu0 %v1999_v28  ;;  %1569 = vmatprep.subr.bf16.mxu1 %v1839_v36 }
  0x38   : > { %1566 = vmatmul.mubr.bf16.vlgmr.msra.gmra.mxu1 %v1745_v32 }
  0x39   : > { %1570 = vmatpush3.bf16.msra.mxu1 %v2033_v35  ;;  %1585 = vmatprep.mubr.msk.bf16.mxu1 %vm1840_vm0, %v1839_v36 }
  0x3a   : > { %788 = vmatpush1.bf16.msra.mxu0 %v2008_v30  ;;  %1571 = vmatprep.subr.bf16.mxu1 %v1839_v36 }
  0x3b   : > { %789 = vmatprep.subr.bf16.mxu0 %v2015_v31 }
  0x3d   : > { %544 = vmatmul.mubr.bf16.gmra.mxu0 %v1745_v32  ;;  %1572 = vmatpush3.bf16.msra.mxu1 %v2053_v39 }
  0x3e   : > { %790 = vmatpush1.bf16.msra.mxu0 %v2022_v33  ;;  %817 = vmatprep.mubr.bf16.mxu0 %v1838_v3 }
  0x3f   : > { %791 = vmatprep.subr.bf16.mxu0 %v2028_v34  ;;  %1573 = vmatprep.subr.bf16.mxu1 %v1839_v36 }
  0x41   : > { %1574 = vmatpush3.bf16.msra.mxu1 %v2074_v42 }
  0x42   : > { %792 = vmatpush1.bf16.msra.mxu0 %v2040_v37  ;;  %1575 = vmatprep.subr.bf16.mxu1 %v1839_v36 }
  0x43   : > { %793 = vmatprep.subr.bf16.mxu0 %v2047_v38 }
  0x45   : > { %1576 = vmatpush3.bf16.msra.mxu1 %v2093_v45 }
  0x46   : > { %794 = vmatpush1.bf16.msra.mxu0 %v2062_v40  ;;  %1577 = vmatprep.subr.bf16.mxu1 %v1839_v36 }
  0x47   : > { %795 = vmatprep.subr.bf16.mxu0 %v2068_v41 }
  0x49   : > { %1578 = vmatpush3.bf16.msra.mxu1 %v2112_v48 }
  0x4a   : > { %796 = vmatpush1.bf16.msra.mxu0 %v2081_v43  ;;  %1579 = vmatprep.subr.bf16.mxu1 %v1839_v36 }
  0x4b   : > { %797 = vmatprep.subr.bf16.mxu0 %v2087_v44 }
  0x4d   : > { %1580 = vmatpush3.bf16.msra.mxu1 %v2128_v51 }
  0x4e   : > { %798 = vmatpush1.bf16.msra.mxu0 %v2100_v46  ;;  %1581 = vmatprep.subr.bf16.mxu1 %v1839_v36 }
  0x4f   : > { %799 = vmatprep.subr.bf16.mxu0 %v2106_v47 }
  0x51   : > { %1582 = vmatpush3.bf16.msra.mxu1 %v2139_v53 }
  0x52   : > { %800 = vmatpush1.bf16.msra.mxu0 %v2119_v49  ;;  %1583 = vmatprep.subr.bf16.mxu1 %v1839_v36 }
  0x53   : > { %896 = vmatprep.subr.bf16.mxu0 %v1985_v25 }
  0x55   : > { %818 = vmatmul.mubr.bf16.vlgmr.msra.gmra.mxu0 %v624_v52  ;;  %1584 = vmatpush3.bf16.msra.mxu1 %v2149_v54 }
  0x56   : > { %897 = vmatpush1.bf16.msra.mxu0 %v1993_v27  ;;  %928 = vmatprep.mubr.bf16.mxu0 %v1838_v3 }
  0x57   : > { %898 = vmatprep.subr.bf16.mxu0 %v1999_v28  ;;  %1589 = vmatprep.subr.bf16.mxu1 %v1839_v36 }
  0x58   : > { %1586 = vmatmul.mubr.bf16.vlgmr.msra.gmra.mxu1 %v624_v52 }
  0x59   : > { %1590 = vmatpush3.bf16.msra.mxu1 %v2033_v35  ;;  %1605 = vmatprep.mubr.msk.bf16.mxu1 %vm1840_vm0, %v1839_v36 }
  0x5a   : > { %899 = vmatpush1.bf16.msra.mxu0 %v2008_v30  ;;  %1591 = vmatprep.subr.bf16.mxu1 %v1839_v36 }
  0x5b   : > { %900 = vmatprep.subr.bf16.mxu0 %v2015_v31 }
  0x5d   : > { %1592 = vmatpush3.bf16.msra.mxu1 %v2053_v39 }
  0x5e   : > { %901 = vmatpush1.bf16.msra.mxu0 %v2022_v33  ;;  %1593 = vmatprep.subr.bf16.mxu1 %v1839_v36 }
  0x5f   : > { %902 = vmatprep.subr.bf16.mxu0 %v2028_v34 }
  0x61   : > { %1594 = vmatpush3.bf16.msra.mxu1 %v2074_v42 }
  0x62   : > { %903 = vmatpush1.bf16.msra.mxu0 %v2040_v37  ;;  %1595 = vmatprep.subr.bf16.mxu1 %v1839_v36 }
  0x63   : > { %904 = vmatprep.subr.bf16.mxu0 %v2047_v38 }
  0x65   : > { %1596 = vmatpush3.bf16.msra.mxu1 %v2093_v45 }
  0x66   : > { %905 = vmatpush1.bf16.msra.mxu0 %v2062_v40  ;;  %1597 = vmatprep.subr.bf16.mxu1 %v1839_v36 }
  0x67   : > { %906 = vmatprep.subr.bf16.mxu0 %v2068_v41 }
  0x69   : > { %1598 = vmatpush3.bf16.msra.mxu1 %v2112_v48 }
  0x6a   : > { %907 = vmatpush1.bf16.msra.mxu0 %v2081_v43  ;;  %1599 = vmatprep.subr.bf16.mxu1 %v1839_v36 }
  0x6b   : > { %908 = vmatprep.subr.bf16.mxu0 %v2087_v44 }
  0x6d   : > { %1600 = vmatpush3.bf16.msra.mxu1 %v2128_v51 }
  0x6e   : > { %909 = vmatpush1.bf16.msra.mxu0 %v2100_v46  ;;  %1601 = vmatprep.subr.bf16.mxu1 %v1839_v36 }
  0x6f   : > { %910 = vmatprep.subr.bf16.mxu0 %v2106_v47 }
  0x71   : > { %1602 = vmatpush3.bf16.msra.mxu1 %v2139_v53 }
  0x72   : > { %911 = vmatpush1.bf16.msra.mxu0 %v2119_v49  ;;  %1603 = vmatprep.subr.bf16.mxu1 %v1839_v36 }
  0x73   : > { %1009 = vmatprep.subr.bf16.mxu0 %v1985_v25 }
  0x75   : > { %1604 = vmatpush3.bf16.msra.mxu1 %v2149_v54 }
  0x76   : > { %1609 = vmatprep.subr.bf16.mxu1 %v1839_v36 }
  0xf5   : > { %v535_v59 = vpop.f32.mrf.mxu0 }
  0xf6   : > { %v536_v22 = vadd.f32 %v535_v59, %v349_v62  ;;  %v2210_v59 = vld [vmem:[%s2355_s4] ss:$0 sm:$0xff] }
  0xf7   : > { %v537_v61 = vpop.f32.mrf.mxu0 }
  0xf8   : > { %v1567_v10 = vpop.f32.mrf.mxu1  ;;  %v538_v55 = vadd.f32 %v537_v61, %v353_v1 }
  0xf9   : > { %v539_v0 = vpop.f32.mrf.mxu0  ;;  %v2197_v12 = vadd.f32 %v1567_v10, %v357_v6 }
  0xfa   : > { %v2189_v2 = vadd.f32 %v539_v0, %v349_v62  ;;  %v588_v14 = vpop.f32.mrf.mxu1 }
  0xfb   : > { %v541_v4 = vpop.f32.mrf.mxu0 }
  0xfc   : > { %v2191_v5 = vadd.f32 %v541_v4, %v353_v1  ;;  %v1568_v17 = vpop.f32.mrf.mxu1 }
  0xfd   : > { %v545_v7 = vpop.f32.mrf.mxu0  ;;  %v2203_v19 = vadd.f32 %v1568_v17, %v357_v6 }
  0xfe   : > { %v2193_v8 = vadd.f32 %v545_v7, %v349_v62  ;;  %v591_v20 = vpop.f32.mrf.mxu1 }
  0xff   : > { %v547_v9 = vpop.f32.mrf.mxu0  ;;  %v2205_v21 = vadd.f32 %v591_v20, %v357_v6 }
 0x100   : > { %v2195_v11 = vadd.f32 %v547_v9, %v353_v1 }
 0x101   : > { %v549_v13 = vpop.f32.mrf.mxu0 }
 0x102   : > { %v2199_v15 = vadd.f32 %v549_v13, %v349_v62 }
 0x103   : > { %v551_v16 = vpop.f32.mrf.mxu0 }
 0x104   : > { %v2201_v18 = vadd.f32 %v551_v16, %v353_v1  ;;  %v589_v1 = vadd.f32 %v588_v14, %v357_v6 }
 0x115   : > { %v819_v23 = vpop.f32.mrf.mxu0 }
 0x116   : > { %v869_v24 = vadd.f32 %v819_v23, %v536_v22  ;;  %v892_v22 = vstv %s891_s10 }
 0x117   : > { %v821_v26 = vpop.f32.mrf.mxu0  ;;  %vm893_vm1 = vcmp.eq.s32.totalorder %v892_v22, 1 }
 0x118   : > { %v1473_v29 = vmul.f32 -1.442695, %v869_v24  ;;  %v860_v56 = vpop.f32.mrf.mxu1  ;;  %v870_v57 = vadd.f32 %v821_v26, %v538_v55 }
 0x119   : > { %v823_v32 = vpop.f32.mrf.mxu0  ;;  %v883_v62 = vadd.f32 %v2210_v59, %v860_v56 }
 0x11a   : > { %1765 = vpow2.f32 %v1473_v29  ;;  %v1587_v58 = vpop.f32.mrf.mxu1  ;;  %v1474_v63 = vmul.f32 -1.442695, %v870_v57 }
 0x11b   : > { %v824_v52 = vpop.f32.mrf.mxu0 }
 0x11c   : > { %v863_v60 = vpop.f32.mrf.mxu1  ;;  %1767 = vpow2.f32 %v1474_v63 }
 0x11e   : > { %v1588_v0 = vpop.f32.mrf.mxu1 }
 0x127   : > { %v1766_v4 = vpop.eup %1765 }
 0x128   : > { %v877_v7 = vadd.f32 1.0, %v1766_v4 }
 0x129   : > { %v1768_v9 = vpop.eup %1767 }
 0x12a   : > { %1769 = vrcp.f32 %v877_v7  ;;  %v878_v13 = vadd.f32 1.0, %v1768_v9 }
 0x137   : > { %v1770_v61 = vpop.eup %1769 }
 0x138   : > { %v884_v10 = vmul.f32 %v1770_v61, %v883_v62 }
 0x13a   : > { %v885_v16 = vadd.f32 %v884_v10, %v589_v1 }
 0x13c   : > { %1771 = vtanh.f32 %v885_v16  ;;  %v1005_v16 = vstv %s1004_s30 }
 0x13d   : > { %1773 = vrcp.f32 %v878_v13  ;;  %vm1006_vm2 = vcmp.eq.s32.totalorder %v1005_v16, 1 }
 0x149   : > { %v1772_v17 = vpop.eup %1771 }
 0x14a   : > { %v887_v20 = vsub.f32 %v2121_v50, %v1772_v17  ;;  %v1774_v23 = vpop.eup %1773 }
 0x14c   : > { %v888_v24 = vmul.f32 %v1774_v23, %v887_v20 }
 0x14e   : > { %v889_v26 = vadd.f32 %v1772_v17, %v888_v24 }
 0x150   : > { %v2216_v29 = vsel %vm893_vm1, %v889_v26, %v2121_v50 }
 0x151   : > { %v895_v6 = vpack.c.bf16 %v2216_v29, %v2216_v29 }
 0x153   : > { %929 = vmatmul.mubr.bf16.vlgmr.msra.gmra.mxu0 %v895_v6  ;;  %1606 = vmatmul.mubr.bf16.vlgmr.msra.gmra.mxu1 %v895_v6 }
 0x154   : > { %1010 = vmatpush1.bf16.msra.mxu0 %v1993_v27  ;;  %1610 = vmatpush3.bf16.msra.mxu1 %v2033_v35 }
 0x155   : > { %1011 = vmatprep.subr.bf16.mxu0 %v1999_v28  ;;  %1611 = vmatprep.subr.bf16.mxu1 %v1839_v36 }
 0x156   : > { %1041 = vmatprep.mubr.bf16.mxu0 %v1838_v3  ;;  %1625 = vmatprep.mubr.msk.bf16.mxu1 %vm1840_vm0, %v1839_v36 }
 0x158   : > { %1012 = vmatpush1.bf16.msra.mxu0 %v2008_v30  ;;  %1612 = vmatpush3.bf16.msra.mxu1 %v2053_v39 }
 0x159   : > { %1013 = vmatprep.subr.bf16.mxu0 %v2015_v31  ;;  %1613 = vmatprep.subr.bf16.mxu1 %v1839_v36 }
 0x15c   : > { %1014 = vmatpush1.bf16.msra.mxu0 %v2022_v33  ;;  %1614 = vmatpush3.bf16.msra.mxu1 %v2074_v42 }
 0x15d   : > { %1015 = vmatprep.subr.bf16.mxu0 %v2028_v34  ;;  %1615 = vmatprep.subr.bf16.mxu1 %v1839_v36 }
 0x160   : > { %1016 = vmatpush1.bf16.msra.mxu0 %v2040_v37  ;;  %1616 = vmatpush3.bf16.msra.mxu1 %v2093_v45 }
 0x161   : > { %1017 = vmatprep.subr.bf16.mxu0 %v2047_v38  ;;  %1617 = vmatprep.subr.bf16.mxu1 %v1839_v36 }
 0x164   : > { %1018 = vmatpush1.bf16.msra.mxu0 %v2062_v40  ;;  %1618 = vmatpush3.bf16.msra.mxu1 %v2112_v48 }
 0x165   : > { %1019 = vmatprep.subr.bf16.mxu0 %v2068_v41  ;;  %1619 = vmatprep.subr.bf16.mxu1 %v1839_v36 }
 0x168   : > { %1020 = vmatpush1.bf16.msra.mxu0 %v2081_v43  ;;  %1620 = vmatpush3.bf16.msra.mxu1 %v2128_v51 }
 0x169   : > { %1021 = vmatprep.subr.bf16.mxu0 %v2087_v44  ;;  %1621 = vmatprep.subr.bf16.mxu1 %v1839_v36 }
 0x16c   : > { %1022 = vmatpush1.bf16.msra.mxu0 %v2100_v46  ;;  %1622 = vmatpush3.bf16.msra.mxu1 %v2139_v53 }
 0x16d   : > { %1023 = vmatprep.subr.bf16.mxu0 %v2106_v47  ;;  %1623 = vmatprep.subr.bf16.mxu1 %v1839_v36 }
 0x170   : > { %1024 = vmatpush1.bf16.msra.mxu0 %v2119_v49  ;;  %1624 = vmatpush3.bf16.msra.mxu1 %v2149_v54 }
 0x171   : > { %1122 = vmatprep.subr.bf16.mxu0 %v1985_v25  ;;  %1629 = vmatprep.subr.bf16.mxu1 %v1839_v36 }
 0x213   : > { %v930_v50 = vpop.f32.mrf.mxu0  ;;  %v971_v14 = vpop.f32.mrf.mxu1 }
 0x214   : > { %v981_v32 = vadd.f32 %v930_v50, %v2189_v2  ;;  %v995_v9 = vadd.f32 %v2210_v59, %v971_v14 }
 0x215   : > { %v932_v52 = vpop.f32.mrf.mxu0  ;;  %v1607_v55 = vpop.f32.mrf.mxu1 }
 0x216   : > { %v1475_v56 = vmul.f32 -1.442695, %v981_v32  ;;  %v982_v0 = vadd.f32 %v932_v52, %v2191_v5 }
 0x217   : > { %v934_v57 = vpop.f32.mrf.mxu0  ;;  %v974_v58 = vpop.f32.mrf.mxu1 }
 0x218   : > { %1775 = vpow2.f32 %v1475_v56  ;;  %v1476_v4 = vmul.f32 -1.442695, %v982_v0 }
 0x219   : > { %v935_v60 = vpop.f32.mrf.mxu0  ;;  %v1608_v63 = vpop.f32.mrf.mxu1 }
 0x21a   : > { %1777 = vpow2.f32 %v1476_v4 }
 0x225   : > { %v1776_v7 = vpop.eup %1775 }
 0x226   : > { %v989_v25 = vadd.f32 1.0, %v1776_v7 }
 0x227   : > { %v1778_v62 = vpop.eup %1777 }
 0x228   : > { %1779 = vrcp.f32 %v989_v25  ;;  %v990_v10 = vadd.f32 1.0, %v1778_v62 }
 0x235   : > { %v1780_v2 = vpop.eup %1779 }
 0x236   : > { %v996_v61 = vmul.f32 %v1780_v2, %v995_v9  ;;  %v1231_v2 = vstv %s1230_s12 }
 0x237   : > { %vm1232_vm4 = vcmp.eq.s32.totalorder %v1231_v2, 1 }
 0x238   : > { %v997_v1 = vadd.f32 %v996_v61, %v2205_v21 }
 0x23a   : > { %1781 = vtanh.f32 %v997_v1 }
 0x23b   : > { %1783 = vrcp.f32 %v990_v10 }
 0x247   : > { %v1782_v13 = vpop.eup %1781 }
 0x248   : > { %v999_v5 = vsub.f32 %v2216_v29, %v1782_v13  ;;  %v1784_v17 = vpop.eup %1783 }
 0x24a   : > { %v1000_v20 = vmul.f32 %v1784_v17, %v999_v5 }
 0x24c   : > { %v1001_v22 = vadd.f32 %v1782_v13, %v1000_v20 }
 0x24e   : > { %v2262_v23 = vsel %vm1006_vm2, %v1001_v22, %v2216_v29 }
 0x24f   : > { %v1008_v21 = vpack.c.bf16 %v2262_v23, %v2262_v23 }
 0x251   : > { %1042 = vmatmul.mubr.bf16.vlgmr.msra.gmra.mxu0 %v1008_v21  ;;  %1626 = vmatmul.mubr.bf16.vlgmr.msra.gmra.mxu1 %v1008_v21 }
 0x252   : > { %1123 = vmatpush1.bf16.msra.mxu0 %v1993_v27  ;;  %1630 = vmatpush3.bf16.msra.mxu1 %v2033_v35 }
 0x253   : > { %1124 = vmatprep.subr.bf16.mxu0 %v1999_v28  ;;  %1631 = vmatprep.subr.bf16.mxu1 %v1839_v36 }
 0x254   : > { %1154 = vmatprep.mubr.bf16.mxu0 %v1838_v3  ;;  %1645 = vmatprep.mubr.msk.bf16.mxu1 %vm1840_vm0, %v1839_v36 }
 0x256   : > { %1125 = vmatpush1.bf16.msra.mxu0 %v2008_v30  ;;  %1632 = vmatpush3.bf16.msra.mxu1 %v2053_v39 }
 0x257   : > { %1126 = vmatprep.subr.bf16.mxu0 %v2015_v31  ;;  %1633 = vmatprep.subr.bf16.mxu1 %v1839_v36 }
 0x25a   : > { %1127 = vmatpush1.bf16.msra.mxu0 %v2022_v33  ;;  %1634 = vmatpush3.bf16.msra.mxu1 %v2074_v42 }
 0x25b   : > { %1128 = vmatprep.subr.bf16.mxu0 %v2028_v34  ;;  %1635 = vmatprep.subr.bf16.mxu1 %v1839_v36 }
 0x25e   : > { %1129 = vmatpush1.bf16.msra.mxu0 %v2040_v37  ;;  %1636 = vmatpush3.bf16.msra.mxu1 %v2093_v45 }
 0x25f   : > { %1130 = vmatprep.subr.bf16.mxu0 %v2047_v38  ;;  %1637 = vmatprep.subr.bf16.mxu1 %v1839_v36 }
 0x262   : > { %1131 = vmatpush1.bf16.msra.mxu0 %v2062_v40  ;;  %1638 = vmatpush3.bf16.msra.mxu1 %v2112_v48 }
 0x263   : > { %1132 = vmatprep.subr.bf16.mxu0 %v2068_v41  ;;  %1639 = vmatprep.subr.bf16.mxu1 %v1839_v36 }
 0x266   : > { %1133 = vmatpush1.bf16.msra.mxu0 %v2081_v43  ;;  %1640 = vmatpush3.bf16.msra.mxu1 %v2128_v51  ;;  %v1118_v51 = vstv %s1117_s9 }
 0x267   : > { %1134 = vmatprep.subr.bf16.mxu0 %v2087_v44  ;;  %1641 = vmatprep.subr.bf16.mxu1 %v1839_v36  ;;  %vm1119_vm3 = vcmp.eq.s32.totalorder %v1118_v51, 1 }
 0x26a   : > { %1135 = vmatpush1.bf16.msra.mxu0 %v2100_v46  ;;  %1642 = vmatpush3.bf16.msra.mxu1 %v2139_v53 }
 0x26b   : > { %1136 = vmatprep.subr.bf16.mxu0 %v2106_v47  ;;  %1643 = vmatprep.subr.bf16.mxu1 %v1839_v36 }
 0x26e   : > { %1137 = vmatpush1.bf16.msra.mxu0 %v2119_v49  ;;  %1644 = vmatpush3.bf16.msra.mxu1 %v2149_v54 }
 0x311   : > { %v1043_v3 = vpop.f32.mrf.mxu0  ;;  %v1084_v27 = vpop.f32.mrf.mxu1 }
 0x312   : > { %v1094_v28 = vadd.f32 %v1043_v3, %v2193_v8  ;;  %v1108_v43 = vadd.f32 %v2210_v59, %v1084_v27 }
 0x313   : > { %v1045_v30 = vpop.f32.mrf.mxu0  ;;  %v1627_v31 = vpop.f32.mrf.mxu1 }
 0x314   : > { %v1477_v33 = vmul.f32 -1.442695, %v1094_v28  ;;  %v1095_v39 = vadd.f32 %v1045_v30, %v2195_v11 }
 0x315   : > { %v1047_v34 = vpop.f32.mrf.mxu0  ;;  %v1087_v35 = vpop.f32.mrf.mxu1 }
 0x316   : > { %1785 = vpow2.f32 %v1477_v33  ;;  %v1478_v36 = vmul.f32 -1.442695, %v1095_v39 }
 0x317   : > { %v1048_v37 = vpop.f32.mrf.mxu0  ;;  %v1628_v38 = vpop.f32.mrf.mxu1 }
 0x318   : > { %1787 = vpow2.f32 %v1478_v36 }
 0x323   : > { %v1786_v40 = vpop.eup %1785 }
 0x324   : > { %v1102_v41 = vadd.f32 1.0, %v1786_v40 }
 0x325   : > { %v1788_v42 = vpop.eup %1787 }
 0x326   : > { %1789 = vrcp.f32 %v1102_v41  ;;  %v1103_v47 = vadd.f32 1.0, %v1788_v42 }
 0x333   : > { %v1790_v44 = vpop.eup %1789 }
 0x334   : > { %v1109_v45 = vmul.f32 %v1790_v44, %v1108_v43 }
 0x336   : > { %v1110_v46 = vadd.f32 %v1109_v45, %v2197_v12 }
 0x338   : > { %1791 = vtanh.f32 %v1110_v46 }
 0x339   : > { %1793 = vrcp.f32 %v1103_v47 }
 0x345   : > { %v1792_v48 = vpop.eup %1791 }
 0x346   : > { %v1112_v49 = vsub.f32 %v2262_v23, %v1792_v48  ;;  %v1794_v53 = vpop.eup %1793 }
 0x348   : > { %v1113_v54 = vmul.f32 %v1794_v53, %v1112_v49 }
 0x34a   : > { %v1114_v8 = vadd.f32 %v1792_v48, %v1113_v54 }
 0x34c   : > { %v1120_v11 = vsel %vm1119_vm3, %v1114_v8, %v2262_v23 }
 0x34d   : > { %v1121_v24 = vpack.c.bf16 %v1120_v11, %v1120_v11 }
 0x34f   : > { %1155 = vmatmul.mubr.bf16.vlgmr.msra.gmra.mxu0 %v1121_v24  ;;  %1646 = vmatmul.mubr.bf16.vlgmr.msra.gmra.mxu1 %v1121_v24 }
 0x40f   : > { %v1156_v12 = vpop.f32.mrf.mxu0  ;;  %v1197_v26 = vpop.f32.mrf.mxu1 }
 0x410   : > { %v1207_v29 = vadd.f32 %v1156_v12, %v2199_v15  ;;  %v1221_v4 = vadd.f32 %v2210_v59, %v1197_v26 }
 0x411   : > { %v1158_v6 = vpop.f32.mrf.mxu0  ;;  %v1647_v50 = vpop.f32.mrf.mxu1 }
 0x412   : > { %v1479_v14 = vmul.f32 -1.442695, %v1207_v29  ;;  %v1208_v57 = vadd.f32 %v1158_v6, %v2201_v18 }
 0x413   : > { %v1160_v32 = vpop.f32.mrf.mxu0  ;;  %v1200_v52 = vpop.f32.mrf.mxu1 }
 0x414   : > { %1795 = vpow2.f32 %v1479_v14  ;;  %v1480_v58 = vmul.f32 -1.442695, %v1208_v57 }
 0x415   : > { %v1161_v55 = vpop.f32.mrf.mxu0  ;;  %v1648_v56 = vpop.f32.mrf.mxu1 }
 0x416   : > { %1797 = vpow2.f32 %v1480_v58 }
 0x421   : > { %v1796_v60 = vpop.eup %1795 }
 0x422   : > { %v1215_v63 = vadd.f32 1.0, %v1796_v60 }
 0x423   : > { %v1798_v0 = vpop.eup %1797 }
 0x424   : > { %1799 = vrcp.f32 %v1215_v63  ;;  %v1216_v62 = vadd.f32 1.0, %v1798_v0 }
 0x431   : > { %v1800_v15 = vpop.eup %1799 }
 0x432   : > { %v1222_v7 = vmul.f32 %v1800_v15, %v1221_v4 }
 0x434   : > { %v1223_v25 = vadd.f32 %v1222_v7, %v2203_v19 }
 0x436   : > { %1801 = vtanh.f32 %v1223_v25 }
 0x437   : > { %1803 = vrcp.f32 %v1216_v62 }
 0x443   : > { %v1802_v9 = vpop.eup %1801 }
 0x444   : > { %v1225_v18 = vsub.f32 %v1120_v11, %v1802_v9  ;;  %v1804_v61 = vpop.eup %1803 }
 0x446   : > { %v1226_v1 = vmul.f32 %v1804_v61, %v1225_v18 }
 0x447   : > { %1238 = sbr.rel (%p1481_p10) target bundleno = 1332 (0x534), region = 56 }
 0x448   : > { %v1227_v10 = vadd.f32 %v1802_v9, %v1226_v1 }
 0x44a   : > { %v1233_v13 = vsel %vm1232_vm4, %v1227_v10, %v1120_v11 }
 0x44b   : > { %1234 = vst [vmem:[#allocation2] sm:$0xff] %v1233_v13 }
 0x44c   : > { %v1805_v19 = vld [vmem:[%s2356_s5 + $0x38] sm:$0xff]   ;;  %v1841_v59 = vmov 0.0   ;;  %v1806_v5 = vld [vmem:[%s2356_s5 + $0x30] sm:$0xff]   ;;  %vm1842_vm5 = vmmov 0   ;;  %v1807_v16 = vld [vmem:[%s2356_s5 + $0x28] sm:$0xff]   ;;  %v1239_v3 = vpack.c.bf16 %v1233_v13, %v1233_v13 }
 0x44d   : > { %1649 = vmatprep.subr.bf16.mxu0 %v1841_v59  ;;  %1665 = vmatprep.mubr.msk.bf16.mxu0 %vm1842_vm5, %v1841_v59  ;;  %v1808_v17 = vld [vmem:[%s2356_s5 + $0x20] sm:$0xff]   ;;  %v1809_v20 = vld [vmem:[%s2356_s5 + $0x18] sm:$0xff]   ;;  %v1810_v22 = vld [vmem:[%s2356_s5 + $0x10] sm:$0xff]  }
 0x44e   : > { %1650 = vmatpush3.bf16.msra.mxu0 %v1805_v19  ;;  %v1811_v23 = vld [vmem:[%s2356_s5 + $0x8] sm:$0xff]   ;;  %v1812_v21 = vld [vmem:[%s2356_s5] sm:$0xff]  }
 0x44f   : > { %1651 = vmatprep.subr.bf16.mxu0 %v1841_v59  ;;  %v1482_v27 = vld [vmem:[%s2357_s6] ss:$0 sm:$0xff] }
 0x452   : > { %1652 = vmatpush3.bf16.msra.mxu0 %v1806_v5 }
 0x453   : > { %1653 = vmatprep.subr.bf16.mxu0 %v1841_v59 }
 0x456   : > { %1654 = vmatpush3.bf16.msra.mxu0 %v1807_v16 }
 0x457   : > { %1655 = vmatprep.subr.bf16.mxu0 %v1841_v59 }
 0x45a   : > { %1656 = vmatpush3.bf16.msra.mxu0 %v1808_v17 }
 0x45b   : > { %1657 = vmatprep.subr.bf16.mxu0 %v1841_v59 }
 0x45e   : > { %1658 = vmatpush3.bf16.msra.mxu0 %v1809_v20 }
 0x45f   : > { %1659 = vmatprep.subr.bf16.mxu0 %v1841_v59 }
 0x462   : > { %1660 = vmatpush3.bf16.msra.mxu0 %v1810_v22 }
 0x463   : > { %1661 = vmatprep.subr.bf16.mxu0 %v1841_v59 }
 0x466   : > { %1662 = vmatpush3.bf16.msra.mxu0 %v1811_v23 }
 0x467   : > { %1663 = vmatprep.subr.bf16.mxu0 %v1841_v59 }
 0x46a   : > { %1664 = vmatpush3.bf16.msra.mxu0 %v1812_v21 }
 0x46d   : > { %1666 = vmatmul.mubr.bf16.vlgmr.msra.gmra.mxu0 %v1239_v3 }
 0x52d   : > { %v1345_v28 = vpop.f32.mrf.mxu0 }
 0x52e   : > { %v1346_v30 = vadd.f32 %v1482_v27, %v1345_v28 }
 0x52f   : > { %v1667_v31 = vpop.f32.mrf.mxu0 }
 0x530   : > { %1351 = vst [vmem:[%s2358_s7] sm:$0xff] %v1346_v30 }
 0x531   : > { %v1348_v33 = vpop.f32.mrf.mxu0 }
 0x533   : > { %v1668_v34 = vpop.f32.mrf.mxu0 }
 0x534 PF: > { %s17_s26 = sadd.s32 1, %s1835_s26   ;;  %s2359_s24 = smov %s1831_s25 }
 0x535   : > { %p14_p11 = scmp.ge.s32.totalorder %s17_s26, 5   ;;  %s2360_s25 = smov %s2362_s27 }
 0x537   :  { %16 = sbr.rel (!%p14_p11) target bundleno = 2 (0x2), region = 89 }

// kernel: gru_model_forward.2
= control target key start
LH: loop header
LB: loop body
LE: loop exit
PB: predicated region body
PF: predicated region fallthrough
CT: control target
= control target key end

     0   :  { %10 = vsyncpa [#allocation5], 0  ;;  %s2709_s0 = inlined_call_operand.vmem [shape: bf16[12,8,128], index: 0, kind: input, shape index: {}]   ;;  %s2710_s1 = inlined_call_operand.hbm [shape: bf16[128,384], index: 1, kind: input, shape index: {}]   ;;  %s2711_s2 = inlined_call_operand.hbm [shape: bf16[128,384], index: 2, kind: input, shape index: {}]   ;;  %s2712_s3 = inlined_call_operand.vmem [shape: f32[1,384], index: 3, kind: input, shape index: {}]   ;;  %s2713_s4 = inlined_call_operand.vmem [shape: f32[1,128], index: 4, kind: input, shape index: {}]   ;;  %s2714_s5 = inlined_call_operand.vmem [shape: bf16[12,8,128], index: 5, kind: output, shape index: {}]  }
   0x1   :  { %11 = vsyncpa [#allocation7], 0  ;;  %s2410_s18 = smov 0   ;;  %s2412_s19 = smov 0  }
   0x2   :  { %s2414_s20 = smov 0  }
   0x3 LB: > { %s1810_s21 = sadd.s32 4294967295, %s2370_s20   ;;  %s26_s22 = sadd.s32 1, %s2366_s19  ;;  %s2370_s20 = sphi %s2414_s20, %s17_s20   ;;  %s2366_s19 = sphi %s2412_s19, %s2719_s19   ;;  %s2362_s18 = sphi %s2410_s18, %s2718_s18  }
   0x4   : > { %p27_p0 = scmp.ge.s32.totalorder %s26_s22, 3  ;;  %p1812_p1 = scmp.ge.s32.totalorder %s2370_s20, 1 }
   0x5   : > { %p174_p2 = scmp.lt.s32.totalorder %s2370_s20, 4  ;;  %p2435_p4 = scmp.eq.s32.totalorder %s1810_s21, 0 }
   0x6   : > { %s2721_s22 = smov (%p27_p0, %s26_s22), 0  ;;  %s2372_s25 = smov [#allocation4]  }
   0x7   : > { %p2431_p3 = pnand %p1812_p1, %p174_p2  ;;  %s186_s26 = sshll.u32 %s2372_s25, 4  ;;  %s187_s26 = int_to_ptr.vmem [resolvable:$true] %s186_s26 }
   0x8   : > { %s2373_s28 = smov [#allocation6]   ;;  %s2299_s30 = scalar_lea.vmem %s187_s26, 3072 }
   0x9   : > { %p2115_p5 = pneg %p2431_p3  ;;  %s199_s29 = sshll.u32 %s2373_s28, 4  ;;  %s200_s29 = int_to_ptr.vmem [resolvable:$true] %s199_s29 }
   0xa   : > { %p2300_p8 = scmp.ne.s32.totalorder %s187_s26, %s2299_s30  ;;  %p2307_p11 = scmp.lt.s32.totalorder %s187_s26, %s187_s26 }
   0xb   : > { %p2443_p6 = pnand %p2435_p4, %p2115_p5  ;;  %p2308_p12 = scmp.lt.s32.totalorder %s2299_s30, %s2299_s30 }
   0xd   : > { %p2290_p7 = pneg %p2443_p6  ;;  %p2309_p13 = por %p2308_p12, %p2307_p11 }
   0xf   : > { %p2302_p9 = pnand %p2300_p8, %p2290_p7 }
  0x11   : > { %p2303_p10 = pneg %p2302_p9 }
  0x13   : > { %p2310_p0 = pnand %p2309_p13, %p2303_p10 }
  0x15   : > { %2313 = shalt.err (!%p2310_p0)
}
  0x16   : > { %s2374_s6 = smov 192   ;;  %s2375_s7 = smov 12  }
  0x17   : > { %2118 = dma.hbm_to_vmem [thread:$0]  (!%p2443_p6), %s2710_s1, 3072, %s187_s26, [#allocation5], %s2374_s6, %s2374_s6, %s2375_s7  }
  0x18   : > { %s2325_s10 = scalar_lea.vmem %s200_s29, 3072  ;;  %p2333_p8 = scmp.lt.s32.totalorder %s200_s29, %s200_s29 }
  0x19   : > { %p2326_p1 = scmp.ne.s32.totalorder %s200_s29, %s2325_s10  ;;  %p2334_p9 = scmp.lt.s32.totalorder %s2325_s10, %s2325_s10 }
  0x1b   : > { %p2328_p2 = pnand %p2326_p1, %p2290_p7  ;;  %p2335_p11 = por %p2334_p9, %p2333_p8 }
  0x1d   : > { %p2329_p5 = pneg %p2328_p2 }
  0x1f   : > { %p2336_p10 = pnand %p2335_p11, %p2329_p5 }
  0x21   : > { %2339 = shalt.err (!%p2336_p10)
}
  0x22   : > { %2121 = dma.hbm_to_vmem [thread:$0]  (!%p2443_p6), %s2711_s2, 3072, %s200_s29, [#allocation7], %s2374_s6, %s2374_s6, %s2375_s7  }
  0x23   : > { %233 = sbr.rel (%p2431_p3) target bundleno = 1134 (0x46e), region = 40 }
  0x28   : > { %2353 = dma.done.wait (%p2435_p4), [#allocation5], 3072  }
  0x29   : > { %2355 = vsyncadd (%p2435_p4), [#allocation5], 4294964224 }
  0x2a   : > { %2357 = dma.done.wait (%p2435_p4), [#allocation7], 3072  }
  0x2b   : > { %2359 = vsyncadd (%p2435_p4), [#allocation7], 4294964224  ;;  %s2476_s13 = sshll.u32 %s2362_s18, 2  ;;  %p1823_p3 = scmp.ne.s32.totalorder %s2362_s18, 0 }
  0x2c   : > { %p272_p6 = scmp.lt.s32.totalorder %s2476_s13, 11 }
  0x2d   : > { %293 = sbr.rel (%p1823_p3) target bundleno = 52 (0x34), region = 52 }
  0x2e   : > { %s273_s14 = scalar_select %p272_p6, %s2476_s13, 11 }
  0x30   : > { %s1820_s15 = sshll.u32 %s273_s14, 2 }
  0x31   : > { %s2483_s21 = scalar_lea.vmem %s2709_s0, %s1820_s15  ;;  %s2488_s26 = scalar_lea.vmem %s2714_s5, %s1820_s15 }
  0x32   : > { %v2376_v0 = vmov 0.0  }
  0x33   : > { %294 = vst [vmem:[#allocation2] sm:$0xff] %v2376_v0 }
  0x34 PF: > { %v2158_v1 = vld [vmem:[#allocation4 + $0xac] ss:$12 sps:$4 sm:$0xff]   ;;  %v2160_v2 = vld [vmem:[#allocation4 + $0xa8] ss:$12 sps:$4 sm:$0xff]   ;;  %v2377_v3 = vmov 0   ;;  %v2204_v33 = vld [vmem:[%s2483_s21 + $0x8] sm:$0xff]   ;;  %v333_v63 = vlaneseq }
  0x35   : > { %520 = vmatprep.mubr.bf16.mxu0 %v2377_v3  ;;  %488 = vmatprep.subr.bf16.mxu0 %v2158_v1  ;;  %v2161_v4 = vld [vmem:[#allocation4 + $0x94] ss:$12 sps:$4 sm:$0xff]   ;;  %v2163_v5 = vld [vmem:[#allocation4 + $0x90] ss:$12 sps:$4 sm:$0xff]   ;;  %v2166_v7 = vld [vmem:[#allocation4 + $0x78] ss:$12 sps:$4 sm:$0xff]  }
  0x36   : > { %489 = vmatpush1.bf16.msra.mxu0 %v2160_v2  ;;  %v2164_v6 = vld [vmem:[#allocation4 + $0x7c] ss:$12 sps:$4 sm:$0xff]   ;;  %v2167_v8 = vld [vmem:[#allocation4 + $0x64] ss:$12 sps:$4 sm:$0xff]   ;;  %v2169_v10 = vld [vmem:[#allocation4 + $0x60] ss:$12 sps:$4 sm:$0xff]  }
  0x37   : > { %490 = vmatprep.subr.bf16.mxu0 %v2161_v4  ;;  %v2179_v9 = vld [vmem:[#allocation4 + $0xb0] ss:$12 sps:$4 sm:$0xff]   ;;  %v2170_v11 = vld [vmem:[#allocation4 + $0x4c] ss:$12 sps:$4 sm:$0xff]   ;;  %v2172_v14 = vld [vmem:[#allocation4 + $0x48] ss:$12 sps:$4 sm:$0xff]  }
  0x38   : > { %2007 = vmatprep.subr.bf16.mxu1 %v2179_v9  ;;  %v2183_v12 = vld [vmem:[#allocation4 + $0x98] ss:$12 sps:$4 sm:$0xff]   ;;  %v2188_v15 = vld [vmem:[#allocation4 + $0x80] ss:$12 sps:$4 sm:$0xff]   ;;  %v2192_v17 = vld [vmem:[#allocation4 + $0x68] ss:$12 sps:$4 sm:$0xff]  }
  0x39   : > { %2008 = vmatpush3.bf16.msra.mxu1 %v2179_v9  ;;  %v2184_v13 = vld [vmem:[%s2483_s21] sm:$0xff]   ;;  %v2173_v16 = vld [vmem:[#allocation4 + $0x34] ss:$12 sps:$4 sm:$0xff]   ;;  %v2180_v22 = vld [vmem:[#allocation4 + $0x4] ss:$12 sps:$4 sm:$0xff]   ;;  %v2378_v38 = vmov 0.0  }
  0x3a   : > { %491 = vmatpush1.bf16.msra.mxu0 %v2163_v5  ;;  %2009 = vmatprep.subr.bf16.mxu1 %v2183_v12  ;;  %v2175_v18 = vld [vmem:[#allocation4 + $0x30] ss:$12 sps:$4 sm:$0xff]   ;;  %v2178_v21 = vld [vmem:[#allocation4 + $0x18] ss:$12 sps:$4 sm:$0xff]   ;;  %v2182_v24 = vld [vmem:[#allocation4] ss:$12 sps:$4 sm:$0xff]  }
  0x3b   : > { %492 = vmatprep.subr.bf16.mxu0 %v2164_v6  ;;  %2023 = vmatprep.mubr.bf16.mxu1 %v2184_v13  ;;  %v2176_v19 = vld [vmem:[#allocation4 + $0x1c] ss:$12 sps:$4 sm:$0xff]   ;;  %v2200_v23 = vld [vmem:[#allocation4 + $0x38] ss:$12 sps:$4 sm:$0xff]   ;;  %v2205_v26 = vld [vmem:[#allocation4 + $0x20] ss:$12 sps:$4 sm:$0xff]  }
  0x3c   : > { %v2196_v20 = vld [vmem:[#allocation4 + $0x50] ss:$12 sps:$4 sm:$0xff]   ;;  %v2493_v25 = vld [vmem:[#allocation6 + $0xac] ss:$12 sps:$4 sm:$0xff]   ;;  %v2495_v27 = vld [vmem:[#allocation6 + $0xa8] ss:$12 sps:$4 sm:$0xff]  }
  0x3d   : > { %2010 = vmatpush3.bf16.msra.mxu1 %v2183_v12  ;;  %v2498_v28 = vld [vmem:[#allocation6 + $0x94] ss:$12 sps:$4 sm:$0xff]   ;;  %v2501_v30 = vld [vmem:[#allocation6 + $0x90] ss:$12 sps:$4 sm:$0xff]   ;;  %v2507_v32 = vld [vmem:[#allocation6 + $0x78] ss:$12 sps:$4 sm:$0xff]  }
  0x3e   : > { %493 = vmatpush1.bf16.msra.mxu0 %v2166_v7  ;;  %2011 = vmatprep.subr.bf16.mxu1 %v2188_v15  ;;  %v2209_v29 = vld [vmem:[#allocation4 + $0x8] ss:$12 sps:$4 sm:$0xff]   ;;  %v2511_v34 = vld [vmem:[#allocation6 + $0x64] ss:$12 sps:$4 sm:$0xff]   ;;  %v2514_v36 = vld [vmem:[#allocation6 + $0x60] ss:$12 sps:$4 sm:$0xff]  }
  0x3f   : > { %494 = vmatprep.subr.bf16.mxu0 %v2167_v8  ;;  %v2505_v31 = vld [vmem:[#allocation6 + $0x7c] ss:$12 sps:$4 sm:$0xff]   ;;  %v2516_v37 = vld [vmem:[#allocation6 + $0x4c] ss:$12 sps:$4 sm:$0xff]   ;;  %vm2379_vm0 = vmmov 0   ;;  %v334_v0 = vshrl.u32 %v333_v63, 7 }
  0x40   : > { %v2213_v35 = vld [vmem:[#allocation6 + $0xb0] ss:$12 sps:$4 sm:$0xff]   ;;  %v2217_v39 = vld [vmem:[#allocation6 + $0x98] ss:$12 sps:$4 sm:$0xff]   ;;  %v2522_v40 = vld [vmem:[#allocation6 + $0x48] ss:$12 sps:$4 sm:$0xff]  }
  0x41   : > { %2012 = vmatpush3.bf16.msra.mxu1 %v2188_v15  ;;  %v2526_v41 = vld [vmem:[#allocation6 + $0x34] ss:$12 sps:$4 sm:$0xff]   ;;  %v2531_v43 = vld [vmem:[#allocation6 + $0x30] ss:$12 sps:$4 sm:$0xff]   ;;  %v2538_v46 = vld [vmem:[#allocation6 + $0x18] ss:$12 sps:$4 sm:$0xff]  }
  0x42   : > { %495 = vmatpush1.bf16.msra.mxu0 %v2169_v10  ;;  %2013 = vmatprep.subr.bf16.mxu1 %v2192_v17  ;;  %v2218_v42 = vld [vmem:[#allocation6 + $0x80] ss:$12 sps:$4 sm:$0xff]   ;;  %v2533_v44 = vld [vmem:[#allocation6 + $0x1c] ss:$12 sps:$4 sm:$0xff]   ;;  %v2543_v47 = vld [vmem:[#allocation6 + $0x4] ss:$12 sps:$4 sm:$0xff]  }
  0x43   : > { %496 = vmatprep.subr.bf16.mxu0 %v2170_v11  ;;  %v2219_v45 = vld [vmem:[#allocation6 + $0x68] ss:$12 sps:$4 sm:$0xff]   ;;  %v2220_v48 = vld [vmem:[#allocation6 + $0x50] ss:$12 sps:$4 sm:$0xff]   ;;  %v2547_v49 = vld [vmem:[#allocation6] ss:$12 sps:$4 sm:$0xff]  }
  0x44   : > { %v2549_v50 = vld [vmem:[#allocation2] sm:$0xff]  ;;  %v2222_v53 = vld [vmem:[#allocation6 + $0x20] ss:$12 sps:$4 sm:$0xff]   ;;  %v2223_v54 = vld [vmem:[#allocation6 + $0x8] ss:$12 sps:$4 sm:$0xff]   ;;  %v335_v1 = vsub.s32 0, %v334_v0 }
  0x45   : > { %2014 = vmatpush3.bf16.msra.mxu1 %v2192_v17  ;;  %v2221_v51 = vld [vmem:[#allocation6 + $0x38] ss:$12 sps:$4 sm:$0xff]   ;;  %v611_v52 = vpack.c.bf16 %v2549_v50, %v2549_v50  ;;  %v2224_v55 = vld [vmem:[#allocation6 + $0xb0] ss:$12 sps:$4 sm:$0xff]   ;;  %v2226_v57 = vld [vmem:[#allocation6 + $0x80] ss:$12 sps:$4 sm:$0xff]  }
  0x46   : > { %497 = vmatpush1.bf16.msra.mxu0 %v2172_v14  ;;  %2015 = vmatprep.subr.bf16.mxu1 %v2196_v20  ;;  %v2225_v56 = vld [vmem:[#allocation6 + $0x98] ss:$12 sps:$4 sm:$0xff]   ;;  %v2227_v58 = vld [vmem:[#allocation6 + $0x68] ss:$12 sps:$4 sm:$0xff]   ;;  %v2228_v59 = vld [vmem:[#allocation6 + $0x50] ss:$12 sps:$4 sm:$0xff]  }
  0x47   : > { %498 = vmatprep.subr.bf16.mxu0 %v2173_v16  ;;  %v2229_v60 = vld [vmem:[#allocation6 + $0x38] ss:$12 sps:$4 sm:$0xff]   ;;  %v2230_v61 = vld [vmem:[#allocation6 + $0x20] ss:$12 sps:$4 sm:$0xff]   ;;  %v2231_v62 = vld [vmem:[#allocation6 + $0x8] ss:$12 sps:$4 sm:$0xff]  }
  0x48   : > { %v331_v2 = vld [vmem:[%s2712_s3] sm:$0x7]  ;;  %v339_v5 = vsub.s32 1, %v334_v0  ;;  %v343_v8 = vsub.s32 2, %v334_v0  ;;  %p877_p4 = scmp.lt.s32.totalorder %s2476_s13, 10  ;;  %s1150_s30 = sadd.s32 1, %s2476_s13 }
  0x49   : > { %2016 = vmatpush3.bf16.msra.mxu1 %v2196_v20  ;;  %v336_v7 = vrot.slane %v331_v2, %v335_v1  ;;  %v2611_v0 = vld [vmem:[%s2713_s4] ss:$0 sm:$0xff]  ;;  %p1151_p7 = scmp.lt.s32.totalorder %s1150_s30, 10  ;;  %s1425_s7 = sadd.s32 2, %s2476_s13 }
  0x4a   : > { %499 = vmatpush1.bf16.msra.mxu0 %v2175_v18  ;;  %2017 = vmatprep.subr.bf16.mxu1 %v2200_v23  ;;  %v340_v10 = vrot.slane %v331_v2, %v339_v5  ;;  %v344_v14 = vrot.slane %v331_v2, %v343_v8  ;;  %s878_s29 = scalar_select %p877_p4, 1, 0 }
  0x4b   : > { %500 = vmatprep.subr.bf16.mxu0 %v2176_v19  ;;  %s1152_s6 = scalar_select %p1151_p7, 1, 0 }
  0x4c   : > { %p1426_p12 = scmp.lt.s32.totalorder %s1425_s7, 10  ;;  %s1700_s9 = sadd.s32 3, %s2476_s13 }
  0x4d   : > { %2018 = vmatpush3.bf16.msra.mxu1 %v2200_v23  ;;  %p1701_p13 = scmp.lt.s32.totalorder %s1700_s9, 10 }
  0x4e   : > { %501 = vmatpush1.bf16.msra.mxu0 %v2178_v21  ;;  %2019 = vmatprep.subr.bf16.mxu1 %v2205_v26  ;;  %s1427_s8 = scalar_select %p1426_p12, 1, 0 }
  0x4f   : > { %502 = vmatprep.subr.bf16.mxu0 %v2180_v22  ;;  %s1702_s10 = scalar_select %p1701_p13, 1, 0 }
  0x51   : > { %2020 = vmatpush3.bf16.msra.mxu1 %v2205_v26 }
  0x52   : > { %503 = vmatpush1.bf16.msra.mxu0 %v2182_v24  ;;  %2021 = vmatprep.subr.bf16.mxu1 %v2209_v29 }
  0x53   : > { %772 = vmatprep.subr.bf16.mxu0 %v2493_v25 }
  0x55   : > { %521 = vmatmul.mubr.bf16.vlgmr.msra.gmra.mxu0 %v2184_v13  ;;  %2022 = vmatpush3.bf16.msra.mxu1 %v2209_v29 }
  0x56   : > { %773 = vmatpush1.bf16.msra.mxu0 %v2495_v27  ;;  %530 = vmatprep.mubr.bf16.mxu0 %v2377_v3 }
  0x57   : > { %774 = vmatprep.subr.bf16.mxu0 %v2498_v28  ;;  %2027 = vmatprep.subr.bf16.mxu1 %v2378_v38 }
  0x58   : > { %2024 = vmatmul.mubr.bf16.vlgmr.msra.gmra.mxu1 %v2204_v33 }
  0x59   : > { %2028 = vmatpush3.bf16.msra.mxu1 %v2213_v35  ;;  %2043 = vmatprep.mubr.msk.bf16.mxu1 %vm2379_vm0, %v2378_v38 }
  0x5a   : > { %775 = vmatpush1.bf16.msra.mxu0 %v2501_v30  ;;  %2029 = vmatprep.subr.bf16.mxu1 %v2378_v38 }
  0x5b   : > { %776 = vmatprep.subr.bf16.mxu0 %v2505_v31 }
  0x5d   : > { %531 = vmatmul.mubr.bf16.gmra.mxu0 %v2204_v33  ;;  %2030 = vmatpush3.bf16.msra.mxu1 %v2217_v39 }
  0x5e   : > { %777 = vmatpush1.bf16.msra.mxu0 %v2507_v32  ;;  %804 = vmatprep.mubr.bf16.mxu0 %v2377_v3 }
  0x5f   : > { %778 = vmatprep.subr.bf16.mxu0 %v2511_v34  ;;  %2031 = vmatprep.subr.bf16.mxu1 %v2378_v38 }
  0x61   : > { %2032 = vmatpush3.bf16.msra.mxu1 %v2218_v42 }
  0x62   : > { %779 = vmatpush1.bf16.msra.mxu0 %v2514_v36  ;;  %2033 = vmatprep.subr.bf16.mxu1 %v2378_v38 }
  0x63   : > { %780 = vmatprep.subr.bf16.mxu0 %v2516_v37 }
  0x65   : > { %2034 = vmatpush3.bf16.msra.mxu1 %v2219_v45 }
  0x66   : > { %781 = vmatpush1.bf16.msra.mxu0 %v2522_v40  ;;  %2035 = vmatprep.subr.bf16.mxu1 %v2378_v38 }
  0x67   : > { %782 = vmatprep.subr.bf16.mxu0 %v2526_v41 }
  0x69   : > { %2036 = vmatpush3.bf16.msra.mxu1 %v2220_v48 }
  0x6a   : > { %783 = vmatpush1.bf16.msra.mxu0 %v2531_v43  ;;  %2037 = vmatprep.subr.bf16.mxu1 %v2378_v38 }
  0x6b   : > { %784 = vmatprep.subr.bf16.mxu0 %v2533_v44 }
  0x6d   : > { %2038 = vmatpush3.bf16.msra.mxu1 %v2221_v51 }
  0x6e   : > { %785 = vmatpush1.bf16.msra.mxu0 %v2538_v46  ;;  %2039 = vmatprep.subr.bf16.mxu1 %v2378_v38 }
  0x6f   : > { %786 = vmatprep.subr.bf16.mxu0 %v2543_v47 }
  0x71   : > { %2040 = vmatpush3.bf16.msra.mxu1 %v2222_v53 }
  0x72   : > { %787 = vmatpush1.bf16.msra.mxu0 %v2547_v49  ;;  %2041 = vmatprep.subr.bf16.mxu1 %v2378_v38 }
  0x73   : > { %1044 = vmatprep.subr.bf16.mxu0 %v2493_v25 }
  0x75   : > { %805 = vmatmul.mubr.bf16.vlgmr.msra.gmra.mxu0 %v611_v52  ;;  %2042 = vmatpush3.bf16.msra.mxu1 %v2223_v54 }
  0x76   : > { %1045 = vmatpush1.bf16.msra.mxu0 %v2495_v27  ;;  %1076 = vmatprep.mubr.bf16.mxu0 %v2377_v3 }
  0x77   : > { %1046 = vmatprep.subr.bf16.mxu0 %v2498_v28  ;;  %2047 = vmatprep.subr.bf16.mxu1 %v2378_v38 }
  0x78   : > { %2044 = vmatmul.mubr.bf16.vlgmr.msra.gmra.mxu1 %v611_v52 }
  0x79   : > { %2063 = vmatprep.mubr.msk.bf16.mxu1 %vm2379_vm0, %v2378_v38  ;;  %2048 = vmatpush3.bf16.msra.mxu1 %v2224_v55 }
  0x7a   : > { %1047 = vmatpush1.bf16.msra.mxu0 %v2501_v30  ;;  %2049 = vmatprep.subr.bf16.mxu1 %v2378_v38 }
  0x7b   : > { %1048 = vmatprep.subr.bf16.mxu0 %v2505_v31 }
  0x7d   : > { %2050 = vmatpush3.bf16.msra.mxu1 %v2225_v56 }
  0x7e   : > { %1049 = vmatpush1.bf16.msra.mxu0 %v2507_v32  ;;  %2051 = vmatprep.subr.bf16.mxu1 %v2378_v38 }
  0x7f   : > { %1050 = vmatprep.subr.bf16.mxu0 %v2511_v34 }
  0x81   : > { %2052 = vmatpush3.bf16.msra.mxu1 %v2226_v57 }
  0x82   : > { %1051 = vmatpush1.bf16.msra.mxu0 %v2514_v36  ;;  %2053 = vmatprep.subr.bf16.mxu1 %v2378_v38 }
  0x83   : > { %1052 = vmatprep.subr.bf16.mxu0 %v2516_v37 }
  0x85   : > { %2054 = vmatpush3.bf16.msra.mxu1 %v2227_v58 }
  0x86   : > { %1053 = vmatpush1.bf16.msra.mxu0 %v2522_v40  ;;  %2055 = vmatprep.subr.bf16.mxu1 %v2378_v38 }
  0x87   : > { %1054 = vmatprep.subr.bf16.mxu0 %v2526_v41 }
  0x89   : > { %2056 = vmatpush3.bf16.msra.mxu1 %v2228_v59 }
  0x8a   : > { %1055 = vmatpush1.bf16.msra.mxu0 %v2531_v43  ;;  %2057 = vmatprep.subr.bf16.mxu1 %v2378_v38 }
  0x8b   : > { %1056 = vmatprep.subr.bf16.mxu0 %v2533_v44 }
  0x8d   : > { %2058 = vmatpush3.bf16.msra.mxu1 %v2229_v60 }
  0x8e   : > { %1057 = vmatpush1.bf16.msra.mxu0 %v2538_v46  ;;  %2059 = vmatprep.subr.bf16.mxu1 %v2378_v38 }
  0x8f   : > { %1058 = vmatprep.subr.bf16.mxu0 %v2543_v47 }
  0x91   : > { %2060 = vmatpush3.bf16.msra.mxu1 %v2230_v61 }
  0x92   : > { %1059 = vmatpush1.bf16.msra.mxu0 %v2547_v49  ;;  %2061 = vmatprep.subr.bf16.mxu1 %v2378_v38 }
  0x93   : > { %1319 = vmatprep.subr.bf16.mxu0 %v2493_v25 }
  0x95   : > { %2062 = vmatpush3.bf16.msra.mxu1 %v2231_v62 }
  0x96   : > { %2067 = vmatprep.subr.bf16.mxu1 %v2378_v38 }
 0x115   : > { %v522_v4 = vpop.f32.mrf.mxu0 }
 0x116   : > { %v523_v42 = vadd.f32 %v522_v4, %v336_v7 }
 0x117   : > { %v524_v6 = vpop.f32.mrf.mxu0 }
 0x118   : > { %v2025_v18 = vpop.f32.mrf.mxu1  ;;  %v525_v55 = vadd.f32 %v524_v6, %v340_v10 }
 0x119   : > { %v526_v9 = vpop.f32.mrf.mxu0  ;;  %v2598_v20 = vadd.f32 %v2025_v18, %v344_v14 }
 0x11a   : > { %v2590_v11 = vadd.f32 %v526_v9, %v336_v7  ;;  %v575_v22 = vpop.f32.mrf.mxu1 }
 0x11b   : > { %v528_v12 = vpop.f32.mrf.mxu0  ;;  %v576_v5 = vadd.f32 %v575_v22, %v344_v14  ;;  %v2233_v22 = vld [vmem:[#allocation6 + $0x98] ss:$12 sps:$4 sm:$0xff]  }
 0x11c   : > { %v2592_v13 = vadd.f32 %v528_v12, %v340_v10  ;;  %v2026_v26 = vpop.f32.mrf.mxu1  ;;  %v879_v12 = vstv %s878_s29 }
 0x11d   : > { %v532_v15 = vpop.f32.mrf.mxu0  ;;  %v2604_v33 = vadd.f32 %v2026_v26, %v344_v14  ;;  %vm880_vm1 = vcmp.eq.s32.totalorder %v879_v12, 1  ;;  %v2235_v26 = vld [vmem:[#allocation6 + $0x68] ss:$12 sps:$4 sm:$0xff]  }
 0x11e   : > { %v2594_v16 = vadd.f32 %v532_v15, %v336_v7  ;;  %v578_v35 = vpop.f32.mrf.mxu1 }
 0x11f   : > { %v534_v17 = vpop.f32.mrf.mxu0  ;;  %v2606_v39 = vadd.f32 %v578_v35, %v344_v14  ;;  %v2236_v35 = vld [vmem:[#allocation6 + $0x50] ss:$12 sps:$4 sm:$0xff]  }
 0x120   : > { %v2596_v19 = vadd.f32 %v534_v17, %v340_v10 }
 0x121   : > { %v536_v21 = vpop.f32.mrf.mxu0 }
 0x122   : > { %v2600_v23 = vadd.f32 %v536_v21, %v336_v7 }
 0x123   : > { %v538_v24 = vpop.f32.mrf.mxu0 }
 0x124   : > { %v2602_v29 = vadd.f32 %v538_v24, %v340_v10  ;;  %v2234_v24 = vld [vmem:[#allocation6 + $0x80] ss:$12 sps:$4 sm:$0xff]  }
 0x135   : > { %v806_v45 = vpop.f32.mrf.mxu0 }
 0x136   : > { %v856_v48 = vadd.f32 %v806_v45, %v523_v42  ;;  %v2237_v42 = vld [vmem:[#allocation6 + $0x38] ss:$12 sps:$4 sm:$0xff]   ;;  %v2239_v45 = vld [vmem:[#allocation6 + $0x8] ss:$12 sps:$4 sm:$0xff]  }
 0x137   : > { %v808_v51 = vpop.f32.mrf.mxu0 }
 0x138   : > { %v1876_v52 = vmul.f32 -1.442695, %v856_v48  ;;  %v847_v56 = vpop.f32.mrf.mxu1  ;;  %v857_v57 = vadd.f32 %v808_v51, %v525_v55 }
 0x139   : > { %v810_v53 = vpop.f32.mrf.mxu0  ;;  %v870_v1 = vadd.f32 %v2611_v0, %v847_v56 }
 0x13a   : > { %2248 = vpow2.f32 %v1876_v52  ;;  %v2045_v58 = vpop.f32.mrf.mxu1  ;;  %v1877_v60 = vmul.f32 -1.442695, %v857_v57 }
 0x13b   : > { %v811_v54 = vpop.f32.mrf.mxu0 }
 0x13c   : > { %v850_v59 = vpop.f32.mrf.mxu1  ;;  %2250 = vpow2.f32 %v1877_v60 }
 0x13e   : > { %v2046_v61 = vpop.f32.mrf.mxu1 }
 0x147   : > { %v2249_v62 = vpop.eup %2248 }
 0x148   : > { %v864_v63 = vadd.f32 1.0, %v2249_v62 }
 0x149   : > { %v2251_v2 = vpop.eup %2250 }
 0x14a   : > { %2252 = vrcp.f32 %v864_v63  ;;  %v865_v7 = vadd.f32 1.0, %v2251_v2 }
 0x157   : > { %v2253_v4 = vpop.eup %2252 }
 0x158   : > { %v871_v6 = vmul.f32 %v2253_v4, %v870_v1 }
 0x15a   : > { %v872_v8 = vadd.f32 %v871_v6, %v576_v5 }
 0x15c   : > { %2254 = vtanh.f32 %v872_v8  ;;  %v1153_v8 = vstv %s1152_s6 }
 0x15d   : > { %2256 = vrcp.f32 %v865_v7  ;;  %vm1154_vm2 = vcmp.eq.s32.totalorder %v1153_v8, 1 }
 0x169   : > { %v2255_v9 = vpop.eup %2254 }
 0x16a   : > { %v874_v10 = vsub.f32 %v2549_v50, %v2255_v9  ;;  %v2257_v15 = vpop.eup %2256 }
 0x16c   : > { %v875_v17 = vmul.f32 %v2257_v15, %v874_v10 }
 0x16e   : > { %v876_v18 = vadd.f32 %v2255_v9, %v875_v17 }
 0x170   : > { %v2617_v21 = vsel %vm880_vm1, %v876_v18, %v2549_v50  ;;  %v2232_v50 = vld [vmem:[#allocation6 + $0xb0] ss:$12 sps:$4 sm:$0xff]  }
 0x171   : > { %v882_v14 = vpack.c.bf16 %v2617_v21, %v2617_v21 }
 0x173   : > { %883 = vst [vmem:[%s2488_s26] sm:$0xf] %v882_v14  ;;  %1077 = vmatmul.mubr.bf16.vlgmr.msra.gmra.mxu0 %v882_v14  ;;  %2064 = vmatmul.mubr.bf16.vlgmr.msra.gmra.mxu1 %v882_v14 }
 0x174   : > { %1320 = vmatpush1.bf16.msra.mxu0 %v2495_v27  ;;  %1351 = vmatprep.mubr.bf16.mxu0 %v2377_v3 }
 0x175   : > { %1321 = vmatprep.subr.bf16.mxu0 %v2498_v28  ;;  %2083 = vmatprep.mubr.msk.bf16.mxu1 %vm2379_vm0, %v2378_v38 }
 0x176   : > { %2068 = vmatpush3.bf16.msra.mxu1 %v2232_v50 }
 0x177   : > { %2069 = vmatprep.subr.bf16.mxu1 %v2378_v38 }
 0x178   : > { %1322 = vmatpush1.bf16.msra.mxu0 %v2501_v30 }
 0x179   : > { %1323 = vmatprep.subr.bf16.mxu0 %v2505_v31 }
 0x17a   : > { %2070 = vmatpush3.bf16.msra.mxu1 %v2233_v22 }
 0x17b   : > { %2071 = vmatprep.subr.bf16.mxu1 %v2378_v38 }
 0x17c   : > { %1324 = vmatpush1.bf16.msra.mxu0 %v2507_v32 }
 0x17d   : > { %1325 = vmatprep.subr.bf16.mxu0 %v2511_v34 }
 0x17e   : > { %2072 = vmatpush3.bf16.msra.mxu1 %v2234_v24 }
 0x17f   : > { %2073 = vmatprep.subr.bf16.mxu1 %v2378_v38 }
 0x180   : > { %1326 = vmatpush1.bf16.msra.mxu0 %v2514_v36 }
 0x181   : > { %1327 = vmatprep.subr.bf16.mxu0 %v2516_v37 }
 0x182   : > { %2074 = vmatpush3.bf16.msra.mxu1 %v2235_v26 }
 0x183   : > { %2075 = vmatprep.subr.bf16.mxu1 %v2378_v38 }
 0x184   : > { %1328 = vmatpush1.bf16.msra.mxu0 %v2522_v40 }
 0x185   : > { %1329 = vmatprep.subr.bf16.mxu0 %v2526_v41 }
 0x186   : > { %2076 = vmatpush3.bf16.msra.mxu1 %v2236_v35 }
 0x187   : > { %2077 = vmatprep.subr.bf16.mxu1 %v2378_v38 }
 0x188   : > { %1330 = vmatpush1.bf16.msra.mxu0 %v2531_v43 }
 0x189   : > { %1331 = vmatprep.subr.bf16.mxu0 %v2533_v44 }
 0x18a   : > { %2078 = vmatpush3.bf16.msra.mxu1 %v2237_v42 }
 0x18b   : > { %2079 = vmatprep.subr.bf16.mxu1 %v2378_v38 }
 0x18c   : > { %1332 = vmatpush1.bf16.msra.mxu0 %v2538_v46 }
 0x18d   : > { %1333 = vmatprep.subr.bf16.mxu0 %v2543_v47 }
 0x190   : > { %1334 = vmatpush1.bf16.msra.mxu0 %v2547_v49 }
 0x191   : > { %1594 = vmatprep.subr.bf16.mxu0 %v2493_v25  ;;  %v2238_v25 = vld [vmem:[#allocation6 + $0x20] ss:$12 sps:$4 sm:$0xff]  }
 0x192   : > { %2080 = vmatpush3.bf16.msra.mxu1 %v2238_v25 }
 0x193   : > { %2081 = vmatprep.subr.bf16.mxu1 %v2378_v38 }
 0x196   : > { %2082 = vmatpush3.bf16.msra.mxu1 %v2239_v45  ;;  %v1428_v45 = vstv %s1427_s8 }
 0x197   : > { %2087 = vmatprep.subr.bf16.mxu1 %v2378_v38  ;;  %vm1429_vm3 = vcmp.eq.s32.totalorder %v1428_v45, 1 }
 0x233   : > { %v1078_v48 = vpop.f32.mrf.mxu0  ;;  %v1119_v51 = vpop.f32.mrf.mxu1 }
 0x234   : > { %v1129_v52 = vadd.f32 %v1078_v48, %v2590_v11  ;;  %v1143_v2 = vadd.f32 %v2611_v0, %v1119_v51 }
 0x235   : > { %v1080_v53 = vpop.f32.mrf.mxu0  ;;  %v2065_v54 = vpop.f32.mrf.mxu1 }
 0x236   : > { %v1902_v55 = vmul.f32 -1.442695, %v1129_v52  ;;  %v1130_v60 = vadd.f32 %v1080_v53, %v2592_v13 }
 0x237   : > { %v1082_v56 = vpop.f32.mrf.mxu0  ;;  %v1122_v57 = vpop.f32.mrf.mxu1 }
 0x238   : > { %2258 = vpow2.f32 %v1902_v55  ;;  %v1903_v61 = vmul.f32 -1.442695, %v1130_v60 }
 0x239   : > { %v1083_v58 = vpop.f32.mrf.mxu0  ;;  %v2066_v59 = vpop.f32.mrf.mxu1 }
 0x23a   : > { %2260 = vpow2.f32 %v1903_v61 }
 0x245   : > { %v2259_v62 = vpop.eup %2258 }
 0x246   : > { %v1137_v63 = vadd.f32 1.0, %v2259_v62 }
 0x247   : > { %v2261_v1 = vpop.eup %2260 }
 0x248   : > { %2262 = vrcp.f32 %v1137_v63  ;;  %v1138_v6 = vadd.f32 1.0, %v2261_v1 }
 0x255   : > { %v2263_v11 = vpop.eup %2262 }
 0x256   : > { %v1144_v4 = vmul.f32 %v2263_v11, %v1143_v2 }
 0x258   : > { %v1145_v5 = vadd.f32 %v1144_v4, %v2606_v39 }
 0x25a   : > { %2264 = vtanh.f32 %v1145_v5 }
 0x25b   : > { %2266 = vrcp.f32 %v1138_v6 }
 0x267   : > { %v2265_v13 = vpop.eup %2264 }
 0x268   : > { %v1147_v7 = vsub.f32 %v2617_v21, %v2265_v13  ;;  %v2267_v9 = vpop.eup %2266 }
 0x26a   : > { %v1148_v10 = vmul.f32 %v2267_v9, %v1147_v7 }
 0x26c   : > { %v1149_v12 = vadd.f32 %v2265_v13, %v1148_v10  ;;  %v1703_v10 = vstv %s1702_s10 }
 0x26d   : > { %vm1704_vm4 = vcmp.eq.s32.totalorder %v1703_v10, 1 }
 0x26e   : > { %v2656_v15 = vsel %vm1154_vm2, %v1149_v12, %v2617_v21 }
 0x26f   : > { %v1156_v39 = vpack.c.bf16 %v2656_v15, %v2656_v15 }
 0x271   : > { %1904 = vst [vmem:[%s2488_s26 + $0x4] sm:$0xf] %v1156_v39  ;;  %1352 = vmatmul.mubr.bf16.vlgmr.msra.gmra.mxu0 %v1156_v39  ;;  %2084 = vmatmul.mubr.bf16.vlgmr.msra.gmra.mxu1 %v1156_v39 }
 0x272   : > { %1595 = vmatpush1.bf16.msra.mxu0 %v2495_v27  ;;  %1626 = vmatprep.mubr.bf16.mxu0 %v2377_v3  ;;  %v2240_v3 = vld [vmem:[#allocation6 + $0xb0] ss:$12 sps:$4 sm:$0xff]   ;;  %v2241_v27 = vld [vmem:[#allocation6 + $0x98] ss:$12 sps:$4 sm:$0xff]  }
 0x273   : > { %1596 = vmatprep.subr.bf16.mxu0 %v2498_v28  ;;  %2103 = vmatprep.mubr.msk.bf16.mxu1 %vm2379_vm0, %v2378_v38  ;;  %v2242_v28 = vld [vmem:[#allocation6 + $0x80] ss:$12 sps:$4 sm:$0xff]  }
 0x274   : > { %2088 = vmatpush3.bf16.msra.mxu1 %v2240_v3 }
 0x275   : > { %2089 = vmatprep.subr.bf16.mxu1 %v2378_v38 }
 0x276   : > { %1597 = vmatpush1.bf16.msra.mxu0 %v2501_v30  ;;  %v2243_v30 = vld [vmem:[#allocation6 + $0x68] ss:$12 sps:$4 sm:$0xff]  }
 0x277   : > { %1598 = vmatprep.subr.bf16.mxu0 %v2505_v31  ;;  %v2244_v31 = vld [vmem:[#allocation6 + $0x50] ss:$12 sps:$4 sm:$0xff]  }
 0x278   : > { %2090 = vmatpush3.bf16.msra.mxu1 %v2241_v27 }
 0x279   : > { %2091 = vmatprep.subr.bf16.mxu1 %v2378_v38 }
 0x27a   : > { %1599 = vmatpush1.bf16.msra.mxu0 %v2507_v32  ;;  %v2245_v32 = vld [vmem:[#allocation6 + $0x38] ss:$12 sps:$4 sm:$0xff]  }
 0x27b   : > { %1600 = vmatprep.subr.bf16.mxu0 %v2511_v34  ;;  %v2246_v34 = vld [vmem:[#allocation6 + $0x20] ss:$12 sps:$4 sm:$0xff]  }
 0x27c   : > { %2092 = vmatpush3.bf16.msra.mxu1 %v2242_v28 }
 0x27d   : > { %2093 = vmatprep.subr.bf16.mxu1 %v2378_v38 }
 0x27e   : > { %1601 = vmatpush1.bf16.msra.mxu0 %v2514_v36  ;;  %v2247_v36 = vld [vmem:[#allocation6 + $0x8] ss:$12 sps:$4 sm:$0xff]  }
 0x27f   : > { %1602 = vmatprep.subr.bf16.mxu0 %v2516_v37 }
 0x280   : > { %2094 = vmatpush3.bf16.msra.mxu1 %v2243_v30 }
 0x281   : > { %2095 = vmatprep.subr.bf16.mxu1 %v2378_v38 }
 0x282   : > { %1603 = vmatpush1.bf16.msra.mxu0 %v2522_v40 }
 0x283   : > { %1604 = vmatprep.subr.bf16.mxu0 %v2526_v41 }
 0x284   : > { %2096 = vmatpush3.bf16.msra.mxu1 %v2244_v31 }
 0x285   : > { %2097 = vmatprep.subr.bf16.mxu1 %v2378_v38 }
 0x286   : > { %1605 = vmatpush1.bf16.msra.mxu0 %v2531_v43 }
 0x287   : > { %1606 = vmatprep.subr.bf16.mxu0 %v2533_v44 }
 0x288   : > { %2098 = vmatpush3.bf16.msra.mxu1 %v2245_v32 }
 0x289   : > { %2099 = vmatprep.subr.bf16.mxu1 %v2378_v38 }
 0x28a   : > { %1607 = vmatpush1.bf16.msra.mxu0 %v2538_v46 }
 0x28b   : > { %1608 = vmatprep.subr.bf16.mxu0 %v2543_v47 }
 0x28c   : > { %2100 = vmatpush3.bf16.msra.mxu1 %v2246_v34 }
 0x28d   : > { %2101 = vmatprep.subr.bf16.mxu1 %v2378_v38 }
 0x28e   : > { %1609 = vmatpush1.bf16.msra.mxu0 %v2547_v49 }
 0x290   : > { %2102 = vmatpush3.bf16.msra.mxu1 %v2247_v36 }
 0x331   : > { %v1353_v37 = vpop.f32.mrf.mxu0  ;;  %v1394_v40 = vpop.f32.mrf.mxu1 }
 0x332   : > { %v1404_v41 = vadd.f32 %v1353_v37, %v2594_v16  ;;  %v1418_v24 = vadd.f32 %v2611_v0, %v1394_v40 }
 0x333   : > { %v1355_v43 = vpop.f32.mrf.mxu0  ;;  %v2085_v44 = vpop.f32.mrf.mxu1 }
 0x334   : > { %v1929_v46 = vmul.f32 -1.442695, %v1404_v41  ;;  %v1405_v21 = vadd.f32 %v1355_v43, %v2596_v19 }
 0x335   : > { %v1357_v47 = vpop.f32.mrf.mxu0  ;;  %v1397_v49 = vpop.f32.mrf.mxu1 }
 0x336   : > { %2268 = vpow2.f32 %v1929_v46  ;;  %v1930_v14 = vmul.f32 -1.442695, %v1405_v21 }
 0x337   : > { %v1358_v17 = vpop.f32.mrf.mxu0  ;;  %v2086_v18 = vpop.f32.mrf.mxu1 }
 0x338   : > { %2270 = vpow2.f32 %v1930_v14 }
 0x343   : > { %v2269_v50 = vpop.eup %2268 }
 0x344   : > { %v1412_v22 = vadd.f32 1.0, %v2269_v50 }
 0x345   : > { %v2271_v38 = vpop.eup %2270 }
 0x346   : > { %2272 = vrcp.f32 %v1412_v22  ;;  %v1413_v42 = vadd.f32 1.0, %v2271_v38 }
 0x353   : > { %v2273_v16 = vpop.eup %2272 }
 0x354   : > { %v1419_v26 = vmul.f32 %v2273_v16, %v1418_v24 }
 0x356   : > { %v1420_v35 = vadd.f32 %v1419_v26, %v2598_v20 }
 0x358   : > { %2274 = vtanh.f32 %v1420_v35 }
 0x359   : > { %2276 = vrcp.f32 %v1413_v42 }
 0x365   : > { %v2275_v19 = vpop.eup %2274 }
 0x366   : > { %v1422_v25 = vsub.f32 %v2656_v15, %v2275_v19  ;;  %v2277_v48 = vpop.eup %2276 }
 0x368   : > { %v1423_v51 = vmul.f32 %v2277_v48, %v1422_v25 }
 0x36a   : > { %v1424_v52 = vadd.f32 %v2275_v19, %v1423_v51 }
 0x36c   : > { %v1430_v53 = vsel %vm1429_vm3, %v1424_v52, %v2656_v15 }
 0x36d   : > { %v1431_v54 = vpack.c.bf16 %v1430_v53, %v1430_v53 }
 0x36f   : > { %1931 = vst [vmem:[%s2488_s26 + $0x8] sm:$0xf] %v1431_v54  ;;  %1627 = vmatmul.mubr.bf16.vlgmr.msra.gmra.mxu0 %v1431_v54  ;;  %2104 = vmatmul.mubr.bf16.vlgmr.msra.gmra.mxu1 %v1431_v54 }
 0x42f   : > { %v1628_v20 = vpop.f32.mrf.mxu0  ;;  %v1669_v55 = vpop.f32.mrf.mxu1 }
 0x430   : > { %v1679_v56 = vadd.f32 %v1628_v20, %v2600_v23  ;;  %v1693_v6 = vadd.f32 %v2611_v0, %v1669_v55 }
 0x431   : > { %v1630_v57 = vpop.f32.mrf.mxu0  ;;  %v2105_v58 = vpop.f32.mrf.mxu1 }
 0x432   : > { %v1956_v59 = vmul.f32 -1.442695, %v1679_v56  ;;  %v1680_v1 = vadd.f32 %v1630_v57, %v2602_v29 }
 0x433   : > { %v1632_v60 = vpop.f32.mrf.mxu0  ;;  %v1672_v61 = vpop.f32.mrf.mxu1 }
 0x434   : > { %2278 = vpow2.f32 %v1956_v59  ;;  %v1957_v2 = vmul.f32 -1.442695, %v1680_v1 }
 0x435   : > { %v1633_v62 = vpop.f32.mrf.mxu0  ;;  %v2106_v63 = vpop.f32.mrf.mxu1 }
 0x436   : > { %2280 = vpow2.f32 %v1957_v2 }
 0x441   : > { %v2279_v11 = vpop.eup %2278 }
 0x442   : > { %v1687_v4 = vadd.f32 1.0, %v2279_v11 }
 0x443   : > { %v2281_v5 = vpop.eup %2280 }
 0x444   : > { %2282 = vrcp.f32 %v1687_v4  ;;  %v1688_v8 = vadd.f32 1.0, %v2281_v5 }
 0x451   : > { %v2283_v23 = vpop.eup %2282 }
 0x452   : > { %v1694_v13 = vmul.f32 %v2283_v23, %v1693_v6 }
 0x454   : > { %v1695_v7 = vadd.f32 %v1694_v13, %v2604_v33 }
 0x456   : > { %2284 = vtanh.f32 %v1695_v7 }
 0x457   : > { %2286 = vrcp.f32 %v1688_v8 }
 0x463   : > { %v2285_v29 = vpop.eup %2284 }
 0x464   : > { %v1697_v9 = vsub.f32 %v1430_v53, %v2285_v29  ;;  %v2287_v12 = vpop.eup %2286 }
 0x466   : > { %v1698_v15 = vmul.f32 %v2287_v12, %v1697_v9 }
 0x468   : > { %v1699_v39 = vadd.f32 %v2285_v29, %v1698_v15 }
 0x46a   : > { %v1705_v3 = vsel %vm1704_vm4, %v1699_v39, %v1430_v53 }
 0x46b   : > { %v1706_v0 = vpack.c.bf16 %v1705_v3, %v1705_v3  ;;  %1709 = vst [vmem:[#allocation2] sm:$0xff] %v1705_v3 }
 0x46d   : > { %1958 = vst [vmem:[%s2488_s26 + $0xc] sm:$0xf] %v1706_v0 }
 0x46e PF: > { %s17_s20 = sadd.s32 1, %s2370_s20   ;;  %s2718_s18 = smov %s2366_s19 }
 0x46f   : > { %p14_p0 = scmp.ge.s32.totalorder %s17_s20, 5   ;;  %s2719_s19 = smov %s2721_s22 }
 0x471   :  { %16 = sbr.rel (!%p14_p0) target bundleno = 3 (0x3), region = 89 }
 0x476   :  { %1738 = vsyncpa [#allocation5], 1 }
 0x477   :  { %1740 = vsyncpa [#allocation5 + $0x1], 1 }
 0x478   :  { %1741 = vsyncpa [#allocation7], 1 }

</bundles_post_ra>
